<compile_context>
chip_gen: v5e
topology: v5e:2x2
jax: 0.10.0
libtpu: 0.0.40
codegen_flags: <defaults>
</compile_context>

<pallas_src>
import functools

import jax
import jax.numpy as jnp
from jax.experimental import pallas as pl
from jax.experimental.pallas import tpu as pltpu

_EPS = 1e-5        # InstanceNorm1d default eps
_SLOPE = 0.2       # LeakyReLU negative slope
_SMALL_K = 8       # below this contraction size, use VPU mul-adds instead of the MXU
_VMEM_LIMIT = 32 * 1024 * 1024   # explicit scoped-VMEM budget (safe on v5e/v6e/v7x)


def _mm_f32(w, x):
    """(Cout, K) @ (K, TF) -> (Cout, TF) f32.  Tiny K (first layer, K=3) goes to the VPU as
    broadcasted multiply-adds instead of a <3%-occupancy MXU matmul."""
    k = w.shape[1]
    if k < _SMALL_K:
        wf = w.astype(jnp.float32)
        xf = x.astype(jnp.float32)
        acc = wf[:, 0:1] * xf[0:1, :]
        for j in range(1, k):
            acc = acc + wf[:, j:j + 1] * xf[j:j + 1, :]
        return acc
    return jnp.dot(w, x, preferred_element_type=jnp.float32)


def _conv_max_kernel(*refs, has_self, apply_stats, f_real, tile_f):
    """One (Cout, TF) tile of: max_k(W_g @ x_k) [+ W_s @ x_self] + b, plus masked
    per-channel sum / sumsq accumulation for InstanceNorm."""
    if has_self:
        xg0, xg1, xg2, xs_ref, wg_ref, ws_ref, b_ref = refs[:7]
        rest = refs[7:]
    else:
        xg0, xg1, xg2, wg_ref, b_ref = refs[:5]
        rest = refs[5:]
    if apply_stats:
        y_ref, sum_ref, ssq_ref, sum_sc, ssq_sc = rest
    else:
        (y_ref,) = rest

    wg = wg_ref[...]
    # max over the 3 neighbour slots of the shared-weight matmul
    # TODO(synk): the three slot matmuls could be fused into one (K, 3*TF) MXU call.
    y = jnp.maximum(jnp.maximum(_mm_f32(wg, xg0[...]), _mm_f32(wg, xg1[...])),
                    _mm_f32(wg, xg2[...]))
    if has_self:
        # self term is identical across the 3 slots -> compute once, add after the max
        y = y + _mm_f32(ws_ref[...], xs_ref[...])
    # bias identical across slots -> add once after the max (equivalent to per-slot add)
    y = y + b_ref[...]
    y_ref[...] = y.astype(y_ref.dtype)

    if apply_stats:
        @pl.when(pl.program_id(0) == 0)
        def _init():
            sum_sc[...] = jnp.zeros_like(sum_sc)
            ssq_sc[...] = jnp.zeros_like(ssq_sc)

        # mask out columns past the real face count (F is padded to a lane-dense multiple)
        col = (jax.lax.broadcasted_iota(jnp.int32, y.shape, 1)
               + pl.program_id(0) * tile_f)
        ym = jnp.where(col < f_real, y, 0.0)
        sum_sc[...] += jnp.sum(ym, axis=1, keepdims=True)
        ssq_sc[...] += jnp.sum(ym * ym, axis=1, keepdims=True)

        @pl.when(pl.program_id(0) == pl.num_programs(0) - 1)
        def _finalize():
            sum_ref[...] = sum_sc[...]
            ssq_ref[...] = ssq_sc[...]


def _norm_act_kernel(y_ref, mean_ref, rstd_ref, o_ref):
    """InstanceNorm (precomputed mean / rstd) + LeakyReLU(0.2), all in f32."""
    yn = (y_ref[...] - mean_ref[...]) * rstd_ref[...]
    o_ref[...] = jnp.where(yn >= 0.0, yn, _SLOPE * yn).astype(o_ref.dtype)


def _conv_layer(xg, xs, wg, ws, b, *, apply_stats, f_real, tile_f):
    """xg: 3 x (Cin, Fp) neighbour-slot inputs; xs: (Cin, Fp) self input or None."""
    cin, fp = xg[0].shape
    cout = wg.shape[0]
    n_tiles = fp // tile_f
    has_self = xs is not None

    tile_spec = pl.BlockSpec((cin, tile_f), lambda f: (0, f))
    w_spec = pl.BlockSpec((cout, cin), lambda f: (0, 0))
    b_spec = pl.BlockSpec((cout, 1), lambda f: (0, 0))
    stat_spec = pl.BlockSpec((cout, 1), lambda f: (0, 0))
    y_spec = pl.BlockSpec((cout, tile_f), lambda f: (0, f))

    if has_self:
        in_arrays = [xg[0], xg[1], xg[2], xs, wg, ws, b]
        in_specs = [tile_spec] * 4 + [w_spec, w_spec, b_spec]
    else:
        in_arrays = [xg[0], xg[1], xg[2], wg, b]
        in_specs = [tile_spec] * 3 + [w_spec, b_spec]

    if apply_stats:
        out_shape = (jax.ShapeDtypeStruct((cout, fp), jnp.float32),
                     jax.ShapeDtypeStruct((cout, 1), jnp.float32),
                     jax.ShapeDtypeStruct((cout, 1), jnp.float32))
        out_specs = (y_spec, stat_spec, stat_spec)
        scratch = [pltpu.VMEM((cout, 1), jnp.float32),
                   pltpu.VMEM((cout, 1), jnp.float32)]
        dims = ("arbitrary",)     # scratch accumulation -> keep the F axis sequential
    else:
        out_shape = jax.ShapeDtypeStruct((cout, fp), jnp.float32)
        out_specs = y_spec
        scratch = []
        dims = ("parallel",)      # independent tiles -> megacore-shardable (v7x)

    kernel = functools.partial(_conv_max_kernel, has_self=has_self,
                               apply_stats=apply_stats, f_real=f_real, tile_f=tile_f)
    return pl.pallas_call(
        kernel,
        grid=(n_tiles,),
        in_specs=in_specs,
        out_specs=out_specs,
        out_shape=out_shape,
        scratch_shapes=scratch,
        compiler_params=pltpu.CompilerParams(
            dimension_semantics=dims, vmem_limit_bytes=_VMEM_LIMIT),
    )(*in_arrays)


def _norm_act(y, mean, rstd, *, tile_f, out_dtype):
    cout, fp = y.shape
    n_tiles = fp // tile_f
    return pl.pallas_call(
        _norm_act_kernel,
        grid=(n_tiles,),
        in_specs=[pl.BlockSpec((cout, tile_f), lambda f: (0, f)),
                  pl.BlockSpec((cout, 1), lambda f: (0, 0)),
                  pl.BlockSpec((cout, 1), lambda f: (0, 0))],
        out_specs=pl.BlockSpec((cout, tile_f), lambda f: (0, f)),
        out_shape=jax.ShapeDtypeStruct((cout, fp), out_dtype),
        compiler_params=pltpu.CompilerParams(
            dimension_semantics=("parallel",), vmem_limit_bytes=_VMEM_LIMIT),
    )(y, mean, rstd)


def init_multi_mesh_conv(number_features, key):
    """Deterministic Conv1d(ksize=1) params: weight (Cout, Cin_eff), bias (Cout, 1)."""
    params = []
    n_layers = len(number_features) - 1
    for i in range(n_layers):
        first = (i == 0)
        cin = number_features[i] if first else number_features[i] * 2
        cout = number_features[i + 1]
        key, kw, kb = jax.random.split(key, 3)
        bound = 1.0 / float(cin) ** 0.5
        w = jax.random.uniform(kw, (cout, cin), jnp.float32, -bound, bound)
        b = jax.random.uniform(kb, (cout, 1), jnp.float32, -bound, bound)
        params.append((w, b))
    return params


def multi_mesh_conv(params, x, gfmm, number_features, *, tile_f=512):
    """x: (1, 3*number_features[0], F) f32 (PyTorch NCW); gfmm: (3, F) i32 -> (1, C_last, F)."""
    assert tile_f % 128 == 0
    n_layers = len(number_features) - 1
    c0 = number_features[0]
    f_real = x.shape[-1]

    # lane-dense padding of the face axis (TF multiple of 128; F padded to a multiple of TF)
    f128 = -(-f_real // 128) * 128
    tf = min(tile_f, f128)
    fp = -(-f_real // tf) * tf
    pad = fp - f_real

    x2d = x[0]
    # first layer: slot k takes channel block k of the raw (3*C0, F) tensor (kept f32; K=3)
    xg = [jnp.pad(x2d[k * c0:(k + 1) * c0, :], ((0, 0), (0, pad))) for k in range(3)]
    xs = None
    # padded face columns index face 0 (any valid index works: they are masked / discarded)
    gfmm_p = jnp.pad(gfmm, ((0, 0), (0, pad)))

    h = None
    for i, (w, b) in enumerate(params):
        first = (i == 0)
        apply_norm = (i < n_layers - 1)
        if first:
            wg, ws = w, None
        else:
            c = h.shape[0]
            # Data-dependent neighbour gather stays in JAX glue (jnp.take clips indices,
            # matching in-range PyTorch gather semantics).
            # TODO(synk): fuse the gather in-kernel (scalar-prefetched gfmm) and keep h
            # VMEM-resident across layers for small meshes.
            xg = [jnp.take(h, gfmm_p[k], axis=1) for k in range(3)]
            xs = h
            wg = w[:, :c].astype(jnp.bfloat16)   # weight columns acting on gathered features
            ws = w[:, c:].astype(jnp.bfloat16)   # weight columns acting on self features

        if apply_norm:
            y, s, ss = _conv_layer(xg, xs, wg, ws, b, apply_stats=True,
                                   f_real=f_real, tile_f=tf)
            mean = s / f_real
            var = jnp.maximum(ss / f_real - mean * mean, 0.0)   # biased variance
            rstd = jax.lax.rsqrt(var + _EPS)
            h = _norm_act(y, mean, rstd, tile_f=tf, out_dtype=jnp.bfloat16)
        else:
            h = _conv_layer(xg, xs, wg, ws, b, apply_stats=False,
                            f_real=f_real, tile_f=tf)

    return h[None, :, :f_real]


def _reference(params, x, gfmm, number_features):
    """Pure-JAX f32 reference of the PyTorch forward pass."""
    h = x[0].astype(jnp.float32)
    n_layers = len(number_features) - 1
    c0 = number_features[0]
    for i, (w, b) in enumerate(params):
        if i == 0:
            ys = [w @ h[k * c0:(k + 1) * c0] + b for k in range(3)]
        else:
            c = h.shape[0]
            ys = [w[:, :c] @ h[:, gfmm[k]] + w[:, c:] @ h + b for k in range(3)]
        y = jnp.maximum(jnp.maximum(ys[0], ys[1]), ys[2])
        if i < n_layers - 1:
            mean = y.mean(axis=1, keepdims=True)
            var = ((y - mean) ** 2).mean(axis=1, keepdims=True)
            y = (y - mean) / jnp.sqrt(var + _EPS)
            y = jnp.where(y >= 0.0, y, _SLOPE * y)
        h = y
    return h[None]


if __name__ == "__main__":
    number_features = (3, 16, 32, 8)
    key = jax.random.PRNGKey(0)
    key, kp = jax.random.split(key)
    params = init_multi_mesh_conv(number_features, kp)

    # two configs: single tile (F=16 padded to 128) and multi-tile + masking (F=300, TF=128)
    for n_faces, tf in ((16, 512), (300, 128)):
        key, kx, kg = jax.random.split(key, 3)
        x = jax.random.normal(kx, (1, 3 * number_features[0], n_faces), jnp.float32)
        gfmm = jax.random.randint(kg, (3, n_faces), 0, n_faces, dtype=jnp.int32)

        run = jax.jit(functools.partial(multi_mesh_conv,
                                        number_features=number_features, tile_f=tf))
        out = jax.block_until_ready(run(params, x, gfmm))

        assert out.shape == (1, number_features[-1], n_faces), out.shape
        assert bool(jnp.all(jnp.isfinite(out)))
        ref = _reference(params, x, gfmm, number_features)
        err = float(jnp.max(jnp.abs(out - ref)))
        scale = float(jnp.max(jnp.abs(ref)))
        assert err <= 0.1 * scale + 0.05, (n_faces, err, scale)  # bf16-activation tolerance

    print("KERNEL_OK")
</pallas_src>

<mosaic_0001>
module attributes {stable_mosaic.version = 11 : i64} {
  func.func @_conv_max_kernel(%arg0: i32, %arg1: memref<3x128xf32, #tpu.memory_space<vmem>>, %arg2: memref<3x128xf32, #tpu.memory_space<vmem>>, %arg3: memref<3x128xf32, #tpu.memory_space<vmem>>, %arg4: memref<16x3xf32, #tpu.memory_space<vmem>>, %arg5: memref<16x1xf32, #tpu.memory_space<vmem>>, %arg6: memref<16x128xf32, #tpu.memory_space<vmem>>, %arg7: memref<16x1xf32, #tpu.memory_space<vmem>>, %arg8: memref<16x1xf32, #tpu.memory_space<vmem>>, %arg9: memref<16x1xf32, #tpu.memory_space<vmem>>, %arg10: memref<16x1xf32, #tpu.memory_space<vmem>>) attributes {dimension_semantics = [#tpu.dimension_semantics<arbitrary>], iteration_bounds = array<i64: 1>, scalar_prefetch = 0 : i64, scratch_operands = 2 : i64, tpu.core_type = #tpu.core_type<tc>, window_params = [{transform_indices = @transform_0, window_bounds = array<i64: 3, 128>}, {transform_indices = @transform_1, window_bounds = array<i64: 3, 128>}, {transform_indices = @transform_2, window_bounds = array<i64: 3, 128>}, {pipeline_mode = #tpu.pipeline_mode<synchronous>, transform_indices = @transform_3, window_bounds = array<i64: 16, 3>}, {pipeline_mode = #tpu.pipeline_mode<synchronous>, transform_indices = @transform_4, window_bounds = array<i64: 16, 1>}, {transform_indices = @transform_5, window_bounds = array<i64: 16, 128>}, {pipeline_mode = #tpu.pipeline_mode<synchronous>, transform_indices = @transform_6, window_bounds = array<i64: 16, 1>}, {pipeline_mode = #tpu.pipeline_mode<synchronous>, transform_indices = @transform_7, window_bounds = array<i64: 16, 1>}]} {
    %c0 = arith.constant 0 : index
    %c0_0 = arith.constant 0 : index
    %0 = vector.load %arg4[%c0, %c0_0] : memref<16x3xf32, #tpu.memory_space<vmem>>, vector<16x3xf32>
    %c0_1 = arith.constant 0 : index
    %c0_2 = arith.constant 0 : index
    %1 = vector.load %arg1[%c0_1, %c0_2] : memref<3x128xf32, #tpu.memory_space<vmem>>, vector<3x128xf32>
    %2 = vector.extract_strided_slice %0 {offsets = [0, 0], sizes = [16, 1], strides = [1, 1]} : vector<16x3xf32> to vector<16x1xf32>
    %3 = vector.extract_strided_slice %1 {offsets = [0, 0], sizes = [1, 128], strides = [1, 1]} : vector<3x128xf32> to vector<1x128xf32>
    %4 = vector.broadcast %2 : vector<16x1xf32> to vector<16x128xf32>
    %5 = vector.broadcast %3 : vector<1x128xf32> to vector<16x128xf32>
    %6 = arith.mulf %4, %5 : vector<16x128xf32>
    %7 = vector.extract_strided_slice %0 {offsets = [0, 1], sizes = [16, 1], strides = [1, 1]} : vector<16x3xf32> to vector<16x1xf32>
    %8 = vector.extract_strided_slice %1 {offsets = [1, 0], sizes = [1, 128], strides = [1, 1]} : vector<3x128xf32> to vector<1x128xf32>
    %9 = vector.broadcast %7 : vector<16x1xf32> to vector<16x128xf32>
    %10 = vector.broadcast %8 : vector<1x128xf32> to vector<16x128xf32>
    %11 = arith.mulf %9, %10 : vector<16x128xf32>
    %12 = arith.addf %6, %11 : vector<16x128xf32>
    %13 = vector.extract_strided_slice %0 {offsets = [0, 2], sizes = [16, 1], strides = [1, 1]} : vector<16x3xf32> to vector<16x1xf32>
    %14 = vector.extract_strided_slice %1 {offsets = [2, 0], sizes = [1, 128], strides = [1, 1]} : vector<3x128xf32> to vector<1x128xf32>
    %15 = vector.broadcast %13 : vector<16x1xf32> to vector<16x128xf32>
    %16 = vector.broadcast %14 : vector<1x128xf32> to vector<16x128xf32>
    %17 = arith.mulf %15, %16 : vector<16x128xf32>
    %18 = arith.addf %12, %17 : vector<16x128xf32>
    %c0_3 = arith.constant 0 : index
    %c0_4 = arith.constant 0 : index
    %19 = vector.load %arg2[%c0_3, %c0_4] : memref<3x128xf32, #tpu.memory_space<vmem>>, vector<3x128xf32>
    %20 = vector.extract_strided_slice %0 {offsets = [0, 0], sizes = [16, 1], strides = [1, 1]} : vector<16x3xf32> to vector<16x1xf32>
    %21 = vector.extract_strided_slice %19 {offsets = [0, 0], sizes = [1, 128], strides = [1, 1]} : vector<3x128xf32> to vector<1x128xf32>
    %22 = vector.broadcast %20 : vector<16x1xf32> to vector<16x128xf32>
    %23 = vector.broadcast %21 : vector<1x128xf32> to vector<16x128xf32>
    %24 = arith.mulf %22, %23 : vector<16x128xf32>
    %25 = vector.extract_strided_slice %0 {offsets = [0, 1], sizes = [16, 1], strides = [1, 1]} : vector<16x3xf32> to vector<16x1xf32>
    %26 = vector.extract_strided_slice %19 {offsets = [1, 0], sizes = [1, 128], strides = [1, 1]} : vector<3x128xf32> to vector<1x128xf32>
    %27 = vector.broadcast %25 : vector<16x1xf32> to vector<16x128xf32>
    %28 = vector.broadcast %26 : vector<1x128xf32> to vector<16x128xf32>
    %29 = arith.mulf %27, %28 : vector<16x128xf32>
    %30 = arith.addf %24, %29 : vector<16x128xf32>
    %31 = vector.extract_strided_slice %0 {offsets = [0, 2], sizes = [16, 1], strides = [1, 1]} : vector<16x3xf32> to vector<16x1xf32>
    %32 = vector.extract_strided_slice %19 {offsets = [2, 0], sizes = [1, 128], strides = [1, 1]} : vector<3x128xf32> to vector<1x128xf32>
    %33 = vector.broadcast %31 : vector<16x1xf32> to vector<16x128xf32>
    %34 = vector.broadcast %32 : vector<1x128xf32> to vector<16x128xf32>
    %35 = arith.mulf %33, %34 : vector<16x128xf32>
    %36 = arith.addf %30, %35 : vector<16x128xf32>
    %37 = arith.maximumf %18, %36 : vector<16x128xf32>
    %c0_5 = arith.constant 0 : index
    %c0_6 = arith.constant 0 : index
    %38 = vector.load %arg3[%c0_5, %c0_6] : memref<3x128xf32, #tpu.memory_space<vmem>>, vector<3x128xf32>
    %39 = vector.extract_strided_slice %0 {offsets = [0, 0], sizes = [16, 1], strides = [1, 1]} : vector<16x3xf32> to vector<16x1xf32>
    %40 = vector.extract_strided_slice %38 {offsets = [0, 0], sizes = [1, 128], strides = [1, 1]} : vector<3x128xf32> to vector<1x128xf32>
    %41 = vector.broadcast %39 : vector<16x1xf32> to vector<16x128xf32>
    %42 = vector.broadcast %40 : vector<1x128xf32> to vector<16x128xf32>
    %43 = arith.mulf %41, %42 : vector<16x128xf32>
    %44 = vector.extract_strided_slice %0 {offsets = [0, 1], sizes = [16, 1], strides = [1, 1]} : vector<16x3xf32> to vector<16x1xf32>
    %45 = vector.extract_strided_slice %38 {offsets = [1, 0], sizes = [1, 128], strides = [1, 1]} : vector<3x128xf32> to vector<1x128xf32>
    %46 = vector.broadcast %44 : vector<16x1xf32> to vector<16x128xf32>
    %47 = vector.broadcast %45 : vector<1x128xf32> to vector<16x128xf32>
    %48 = arith.mulf %46, %47 : vector<16x128xf32>
    %49 = arith.addf %43, %48 : vector<16x128xf32>
    %50 = vector.extract_strided_slice %0 {offsets = [0, 2], sizes = [16, 1], strides = [1, 1]} : vector<16x3xf32> to vector<16x1xf32>
    %51 = vector.extract_strided_slice %38 {offsets = [2, 0], sizes = [1, 128], strides = [1, 1]} : vector<3x128xf32> to vector<1x128xf32>
    %52 = vector.broadcast %50 : vector<16x1xf32> to vector<16x128xf32>
    %53 = vector.broadcast %51 : vector<1x128xf32> to vector<16x128xf32>
    %54 = arith.mulf %52, %53 : vector<16x128xf32>
    %55 = arith.addf %49, %54 : vector<16x128xf32>
    %56 = arith.maximumf %37, %55 : vector<16x128xf32>
    %c0_7 = arith.constant 0 : index
    %c0_8 = arith.constant 0 : index
    %57 = vector.load %arg5[%c0_7, %c0_8] : memref<16x1xf32, #tpu.memory_space<vmem>>, vector<16x1xf32>
    %58 = vector.broadcast %57 : vector<16x1xf32> to vector<16x128xf32>
    %59 = arith.addf %56, %58 : vector<16x128xf32>
    %c0_9 = arith.constant 0 : index
    %c0_10 = arith.constant 0 : index
    %60 = vector.load %arg6[%c0_9, %c0_10] : memref<16x128xf32, #tpu.memory_space<vmem>>, vector<16x128xf32>
    tpu.vector_store %arg6[%c0_9, %c0_10], %59 {strides = array<i32>} : memref<16x128xf32, #tpu.memory_space<vmem>>, vector<16x128xf32>,
    %c0_i32 = arith.constant 0 : i32
    %61 = arith.cmpi eq, %arg0, %c0_i32 : i32
    %62 = arith.extui %61 : i1 to i32
    %c0_i32_11 = arith.constant 0 : i32
    %63 = arith.cmpi ne, %62, %c0_i32_11 : i32
    scf.if %63 {
      %cst_24 = arith.constant 0.000000e+00 : f32
      %86 = vector.broadcast %cst_24 : f32 to vector<16x1xf32>
      %c0_25 = arith.constant 0 : index
      %c0_26 = arith.constant 0 : index
      %87 = vector.load %arg9[%c0_25, %c0_26] : memref<16x1xf32, #tpu.memory_space<vmem>>, vector<16x1xf32>
      tpu.vector_store %arg9[%c0_25, %c0_26], %86 {strides = array<i32>} : memref<16x1xf32, #tpu.memory_space<vmem>>, vector<16x1xf32>,
      %cst_27 = arith.constant 0.000000e+00 : f32
      %88 = vector.broadcast %cst_27 : f32 to vector<16x1xf32>
      %c0_28 = arith.constant 0 : index
      %c0_29 = arith.constant 0 : index
      %89 = vector.load %arg10[%c0_28, %c0_29] : memref<16x1xf32, #tpu.memory_space<vmem>>, vector<16x1xf32>
      tpu.vector_store %arg10[%c0_28, %c0_29], %88 {strides = array<i32>} : memref<16x1xf32, #tpu.memory_space<vmem>>, vector<16x1xf32>,
    } else {
    }
    %64 = tpu.iota {dimensions = array<i32: 1>} : vector<16x128xi32>
    %c128_i32 = arith.constant 128 : i32
    %65 = arith.muli %arg0, %c128_i32 : i32
    %66 = vector.broadcast %65 : i32 to vector<16x128xi32>
    %67 = arith.addi %64, %66 : vector<16x128xi32>
    %c16_i32 = arith.constant 16 : i32
    %68 = vector.broadcast %c16_i32 : i32 to vector<16x128xi32>
    %69 = arith.cmpi slt, %67, %68 : vector<16x128xi32>
    %cst = arith.constant 0.000000e+00 : f32
    %70 = vector.broadcast %cst : f32 to vector<16x128xf32>
    %71 = arith.select %69, %59, %70 : vector<16x128xi1>, vector<16x128xf32>
    %c0_12 = arith.constant 0 : index
    %c0_13 = arith.constant 0 : index
    %72 = vector.load %arg9[%c0_12, %c0_13] : memref<16x1xf32, #tpu.memory_space<vmem>>, vector<16x1xf32>
    %cst_14 = arith.constant dense<0.000000e+00> : vector<16xf32>
    %73 = vector.multi_reduction <add>, %71, %cst_14 [1] : vector<16x128xf32> to vector<16xf32>
    %74 = vector.shape_cast %73 : vector<16xf32> to vector<16x1xf32>
    %75 = arith.addf %72, %74 : vector<16x1xf32>
    %c0_15 = arith.constant 0 : index
    %c0_16 = arith.constant 0 : index
    %76 = vector.load %arg9[%c0_15, %c0_16] : memref<16x1xf32, #tpu.memory_space<vmem>>, vector<16x1xf32>
    tpu.vector_store %arg9[%c0_15, %c0_16], %75 {strides = array<i32>} : memref<16x1xf32, #tpu.memory_space<vmem>>, vector<16x1xf32>,
    %c0_17 = arith.constant 0 : index
    %c0_18 = arith.constant 0 : index
    %77 = vector.load %arg10[%c0_17, %c0_18] : memref<16x1xf32, #tpu.memory_space<vmem>>, vector<16x1xf32>
    %78 = arith.mulf %71, %71 : vector<16x128xf32>
    %cst_19 = arith.constant dense<0.000000e+00> : vector<16xf32>
    %79 = vector.multi_reduction <add>, %78, %cst_19 [1] : vector<16x128xf32> to vector<16xf32>
    %80 = vector.shape_cast %79 : vector<16xf32> to vector<16x1xf32>
    %81 = arith.addf %77, %80 : vector<16x1xf32>
    %c0_20 = arith.constant 0 : index
    %c0_21 = arith.constant 0 : index
    %82 = vector.load %arg10[%c0_20, %c0_21] : memref<16x1xf32, #tpu.memory_space<vmem>>, vector<16x1xf32>
    tpu.vector_store %arg10[%c0_20, %c0_21], %81 {strides = array<i32>} : memref<16x1xf32, #tpu.memory_space<vmem>>, vector<16x1xf32>,
    %c0_i32_22 = arith.constant 0 : i32
    %83 = arith.cmpi eq, %arg0, %c0_i32_22 : i32
    %84 = arith.extui %83 : i1 to i32
    %c0_i32_23 = arith.constant 0 : i32
    %85 = arith.cmpi ne, %84, %c0_i32_23 : i32
    scf.if %85 {
      %c0_24 = arith.constant 0 : index
      %c0_25 = arith.constant 0 : index
      %86 = vector.load %arg9[%c0_24, %c0_25] : memref<16x1xf32, #tpu.memory_space<vmem>>, vector<16x1xf32>
      %c0_26 = arith.constant 0 : index
      %c0_27 = arith.constant 0 : index
      %87 = vector.load %arg7[%c0_26, %c0_27] : memref<16x1xf32, #tpu.memory_space<vmem>>, vector<16x1xf32>
      tpu.vector_store %arg7[%c0_26, %c0_27], %86 {strides = array<i32>} : memref<16x1xf32, #tpu.memory_space<vmem>>, vector<16x1xf32>,
      %c0_28 = arith.constant 0 : index
      %c0_29 = arith.constant 0 : index
      %88 = vector.load %arg10[%c0_28, %c0_29] : memref<16x1xf32, #tpu.memory_space<vmem>>, vector<16x1xf32>
      %c0_30 = arith.constant 0 : index
      %c0_31 = arith.constant 0 : index
      %89 = vector.load %arg8[%c0_30, %c0_31] : memref<16x1xf32, #tpu.memory_space<vmem>>, vector<16x1xf32>
      tpu.vector_store %arg8[%c0_30, %c0_31], %88 {strides = array<i32>} : memref<16x1xf32, #tpu.memory_space<vmem>>, vector<16x1xf32>,
    } else {
    }
    return
  }
  func.func @transform_0(%arg0: i32) -> (i32, i32) {
    %c0_i32 = arith.constant 0 : i32
    %c0_i32_0 = arith.constant 0 : i32
    return %c0_i32, %arg0 : i32, i32
  }
  func.func @transform_1(%arg0: i32) -> (i32, i32) {
    %c0_i32 = arith.constant 0 : i32
    %c0_i32_0 = arith.constant 0 : i32
    return %c0_i32, %arg0 : i32, i32
  }
  func.func @transform_2(%arg0: i32) -> (i32, i32) {
    %c0_i32 = arith.constant 0 : i32
    %c0_i32_0 = arith.constant 0 : i32
    return %c0_i32, %arg0 : i32, i32
  }
  func.func @transform_3(%arg0: i32) -> (i32, i32) {
    %c0_i32 = arith.constant 0 : i32
    %c0_i32_0 = arith.constant 0 : i32
    %c0_i32_1 = arith.constant 0 : i32
    return %c0_i32, %c0_i32_0 : i32, i32
  }
  func.func @transform_4(%arg0: i32) -> (i32, i32) {
    %c0_i32 = arith.constant 0 : i32
    %c0_i32_0 = arith.constant 0 : i32
    %c0_i32_1 = arith.constant 0 : i32
    return %c0_i32, %c0_i32_0 : i32, i32
  }
  func.func @transform_5(%arg0: i32) -> (i32, i32) {
    %c0_i32 = arith.constant 0 : i32
    %c0_i32_0 = arith.constant 0 : i32
    return %c0_i32, %arg0 : i32, i32
  }
  func.func @transform_6(%arg0: i32) -> (i32, i32) {
    %c0_i32 = arith.constant 0 : i32
    %c0_i32_0 = arith.constant 0 : i32
    %c0_i32_1 = arith.constant 0 : i32
    return %c0_i32, %c0_i32_0 : i32, i32
  }
  func.func @transform_7(%arg0: i32) -> (i32, i32) {
    %c0_i32 = arith.constant 0 : i32
    %c0_i32_0 = arith.constant 0 : i32
    %c0_i32_1 = arith.constant 0 : i32
    return %c0_i32, %c0_i32_0 : i32, i32
  }
}

module attributes {stable_mosaic.version = 11 : i64} {
  func.func @_norm_act_kernel(%arg0: i32, %arg1: memref<16x128xf32, #tpu.memory_space<vmem>>, %arg2: memref<16x1xf32, #tpu.memory_space<vmem>>, %arg3: memref<16x1xf32, #tpu.memory_space<vmem>>, %arg4: memref<16x128xbf16, #tpu.memory_space<vmem>>) attributes {dimension_semantics = [#tpu.dimension_semantics<parallel>], iteration_bounds = array<i64: 1>, scalar_prefetch = 0 : i64, scratch_operands = 0 : i64, tpu.core_type = #tpu.core_type<tc>, window_params = [{transform_indices = @transform_0, window_bounds = array<i64: 16, 128>}, {pipeline_mode = #tpu.pipeline_mode<synchronous>, transform_indices = @transform_1, window_bounds = array<i64: 16, 1>}, {pipeline_mode = #tpu.pipeline_mode<synchronous>, transform_indices = @transform_2, window_bounds = array<i64: 16, 1>}, {transform_indices = @transform_3, window_bounds = array<i64: 16, 128>}]} {
    %c0 = arith.constant 0 : index
    %c0_0 = arith.constant 0 : index
    %0 = vector.load %arg1[%c0, %c0_0] : memref<16x128xf32, #tpu.memory_space<vmem>>, vector<16x128xf32>
    %c0_1 = arith.constant 0 : index
    %c0_2 = arith.constant 0 : index
    %1 = vector.load %arg2[%c0_1, %c0_2] : memref<16x1xf32, #tpu.memory_space<vmem>>, vector<16x1xf32>
    %2 = vector.broadcast %1 : vector<16x1xf32> to vector<16x128xf32>
    %3 = arith.subf %0, %2 : vector<16x128xf32>
    %c0_3 = arith.constant 0 : index
    %c0_4 = arith.constant 0 : index
    %4 = vector.load %arg3[%c0_3, %c0_4] : memref<16x1xf32, #tpu.memory_space<vmem>>, vector<16x1xf32>
    %5 = vector.broadcast %4 : vector<16x1xf32> to vector<16x128xf32>
    %6 = arith.mulf %3, %5 : vector<16x128xf32>
    %cst = arith.constant 0.000000e+00 : f32
    %7 = vector.broadcast %cst : f32 to vector<16x128xf32>
    %8 = arith.cmpf oge, %6, %7 : vector<16x128xf32>
    %cst_5 = arith.constant 2.000000e-01 : f32
    %9 = vector.broadcast %cst_5 : f32 to vector<16x128xf32>
    %10 = arith.mulf %9, %6 : vector<16x128xf32>
    %11 = arith.select %8, %6, %10 : vector<16x128xi1>, vector<16x128xf32>
    %12 = arith.truncf %11 : vector<16x128xf32> to vector<16x128xbf16>
    %c0_6 = arith.constant 0 : index
    %c0_7 = arith.constant 0 : index
    %13 = vector.load %arg4[%c0_6, %c0_7] : memref<16x128xbf16, #tpu.memory_space<vmem>>, vector<16x128xbf16>
    tpu.vector_store %arg4[%c0_6, %c0_7], %12 {strides = array<i32>} : memref<16x128xbf16, #tpu.memory_space<vmem>>, vector<16x128xbf16>,
    return
  }
  func.func @transform_0(%arg0: i32) -> (i32, i32) {
    %c0_i32 = arith.constant 0 : i32
    %c0_i32_0 = arith.constant 0 : i32
    return %c0_i32, %arg0 : i32, i32
  }
  func.func @transform_1(%arg0: i32) -> (i32, i32) {
    %c0_i32 = arith.constant 0 : i32
    %c0_i32_0 = arith.constant 0 : i32
    %c0_i32_1 = arith.constant 0 : i32
    return %c0_i32, %c0_i32_0 : i32, i32
  }
  func.func @transform_2(%arg0: i32) -> (i32, i32) {
    %c0_i32 = arith.constant 0 : i32
    %c0_i32_0 = arith.constant 0 : i32
    %c0_i32_1 = arith.constant 0 : i32
    return %c0_i32, %c0_i32_0 : i32, i32
  }
  func.func @transform_3(%arg0: i32) -> (i32, i32) {
    %c0_i32 = arith.constant 0 : i32
    %c0_i32_0 = arith.constant 0 : i32
    return %c0_i32, %arg0 : i32, i32
  }
}

module attributes {stable_mosaic.version = 11 : i64} {
  func.func @_conv_max_kernel(%arg0: i32, %arg1: memref<16x128xbf16, #tpu.memory_space<vmem>>, %arg2: memref<16x128xbf16, #tpu.memory_space<vmem>>, %arg3: memref<16x128xbf16, #tpu.memory_space<vmem>>, %arg4: memref<16x128xbf16, #tpu.memory_space<vmem>>, %arg5: memref<32x16xbf16, #tpu.memory_space<vmem>>, %arg6: memref<32x16xbf16, #tpu.memory_space<vmem>>, %arg7: memref<32x1xf32, #tpu.memory_space<vmem>>, %arg8: memref<32x128xf32, #tpu.memory_space<vmem>>, %arg9: memref<32x1xf32, #tpu.memory_space<vmem>>, %arg10: memref<32x1xf32, #tpu.memory_space<vmem>>, %arg11: memref<32x1xf32, #tpu.memory_space<vmem>>, %arg12: memref<32x1xf32, #tpu.memory_space<vmem>>) attributes {dimension_semantics = [#tpu.dimension_semantics<arbitrary>], iteration_bounds = array<i64: 1>, scalar_prefetch = 0 : i64, scratch_operands = 2 : i64, tpu.core_type = #tpu.core_type<tc>, window_params = [{transform_indices = @transform_0, window_bounds = array<i64: 16, 128>}, {transform_indices = @transform_1, window_bounds = array<i64: 16, 128>}, {transform_indices = @transform_2, window_bounds = array<i64: 16, 128>}, {transform_indices = @transform_3, window_bounds = array<i64: 16, 128>}, {pipeline_mode = #tpu.pipeline_mode<synchronous>, transform_indices = @transform_4, window_bounds = array<i64: 32, 16>}, {pipeline_mode = #tpu.pipeline_mode<synchronous>, transform_indices = @transform_5, window_bounds = array<i64: 32, 16>}, {pipeline_mode = #tpu.pipeline_mode<synchronous>, transform_indices = @transform_6, window_bounds = array<i64: 32, 1>}, {transform_indices = @transform_7, window_bounds = array<i64: 32, 128>}, {pipeline_mode = #tpu.pipeline_mode<synchronous>, transform_indices = @transform_8, window_bounds = array<i64: 32, 1>}, {pipeline_mode = #tpu.pipeline_mode<synchronous>, transform_indices = @transform_9, window_bounds = array<i64: 32, 1>}]} {
    %c0 = arith.constant 0 : index
    %c0_0 = arith.constant 0 : index
    %0 = vector.load %arg5[%c0, %c0_0] : memref<32x16xbf16, #tpu.memory_space<vmem>>, vector<32x16xbf16>
    %c0_1 = arith.constant 0 : index
    %c0_2 = arith.constant 0 : index
    %1 = vector.load %arg1[%c0_1, %c0_2] : memref<16x128xbf16, #tpu.memory_space<vmem>>, vector<16x128xbf16>
    %cst = arith.constant dense<0.000000e+00> : vector<32x128xf32>
    %2 = tpu.matmul %0, %1, %cst {dimension_numbers = #tpu.dot_dimension_numbers<[1], [0], [0], [1], [0, 0, 1, 1], [], []>} : vector<32x16xbf16>, vector<16x128xbf16>, vector<32x128xf32> -> vector<32x128xf32>
    %c0_3 = arith.constant 0 : index
    %c0_4 = arith.constant 0 : index
    %3 = vector.load %arg2[%c0_3, %c0_4] : memref<16x128xbf16, #tpu.memory_space<vmem>>, vector<16x128xbf16>
    %cst_5 = arith.constant dense<0.000000e+00> : vector<32x128xf32>
    %4 = tpu.matmul %0, %3, %cst_5 {dimension_numbers = #tpu.dot_dimension_numbers<[1], [0], [0], [1], [0, 0, 1, 1], [], []>} : vector<32x16xbf16>, vector<16x128xbf16>, vector<32x128xf32> -> vector<32x128xf32>
    %5 = arith.maximumf %2, %4 : vector<32x128xf32>
    %c0_6 = arith.constant 0 : index
    %c0_7 = arith.constant 0 : index
    %6 = vector.load %arg3[%c0_6, %c0_7] : memref<16x128xbf16, #tpu.memory_space<vmem>>, vector<16x128xbf16>
    %cst_8 = arith.constant dense<0.000000e+00> : vector<32x128xf32>
    %7 = tpu.matmul %0, %6, %cst_8 {dimension_numbers = #tpu.dot_dimension_numbers<[1], [0], [0], [1], [0, 0, 1, 1], [], []>} : vector<32x16xbf16>, vector<16x128xbf16>, vector<32x128xf32> -> vector<32x128xf32>
    %8 = arith.maximumf %5, %7 : vector<32x128xf32>
    %c0_9 = arith.constant 0 : index
    %c0_10 = arith.constant 0 : index
    %9 = vector.load %arg6[%c0_9, %c0_10] : memref<32x16xbf16, #tpu.memory_space<vmem>>, vector<32x16xbf16>
    %c0_11 = arith.constant 0 : index
    %c0_12 = arith.constant 0 : index
    %10 = vector.load %arg4[%c0_11, %c0_12] : memref<16x128xbf16, #tpu.memory_space<vmem>>, vector<16x128xbf16>
    %cst_13 = arith.constant dense<0.000000e+00> : vector<32x128xf32>
    %11 = tpu.matmul %9, %10, %cst_13 {dimension_numbers = #tpu.dot_dimension_numbers<[1], [0], [0], [1], [0, 0, 1, 1], [], []>} : vector<32x16xbf16>, vector<16x128xbf16>, vector<32x128xf32> -> vector<32x128xf32>
    %12 = arith.addf %8, %11 : vector<32x128xf32>
    %c0_14 = arith.constant 0 : index
    %c0_15 = arith.constant 0 : index
    %13 = vector.load %arg7[%c0_14, %c0_15] : memref<32x1xf32, #tpu.memory_space<vmem>>, vector<32x1xf32>
    %14 = vector.broadcast %13 : vector<32x1xf32> to vector<32x128xf32>
    %15 = arith.addf %12, %14 : vector<32x128xf32>
    %c0_16 = arith.constant 0 : index
    %c0_17 = arith.constant 0 : index
    %16 = vector.load %arg8[%c0_16, %c0_17] : memref<32x128xf32, #tpu.memory_space<vmem>>, vector<32x128xf32>
    tpu.vector_store %arg8[%c0_16, %c0_17], %15 {strides = array<i32>} : memref<32x128xf32, #tpu.memory_space<vmem>>, vector<32x128xf32>,
    %c0_i32 = arith.constant 0 : i32
    %17 = arith.cmpi eq, %arg0, %c0_i32 : i32
    %18 = arith.extui %17 : i1 to i32
    %c0_i32_18 = arith.constant 0 : i32
    %19 = arith.cmpi ne, %18, %c0_i32_18 : i32
    scf.if %19 {
      %cst_32 = arith.constant 0.000000e+00 : f32
      %42 = vector.broadcast %cst_32 : f32 to vector<32x1xf32>
      %c0_33 = arith.constant 0 : index
      %c0_34 = arith.constant 0 : index
      %43 = vector.load %arg11[%c0_33, %c0_34] : memref<32x1xf32, #tpu.memory_space<vmem>>, vector<32x1xf32>
      tpu.vector_store %arg11[%c0_33, %c0_34], %42 {strides = array<i32>} : memref<32x1xf32, #tpu.memory_space<vmem>>, vector<32x1xf32>,
      %cst_35 = arith.constant 0.000000e+00 : f32
      %44 = vector.broadcast %cst_35 : f32 to vector<32x1xf32>
      %c0_36 = arith.constant 0 : index
      %c0_37 = arith.constant 0 : index
      %45 = vector.load %arg12[%c0_36, %c0_37] : memref<32x1xf32, #tpu.memory_space<vmem>>, vector<32x1xf32>
      tpu.vector_store %arg12[%c0_36, %c0_37], %44 {strides = array<i32>} : memref<32x1xf32, #tpu.memory_space<vmem>>, vector<32x1xf32>,
    } else {
    }
    %20 = tpu.iota {dimensions = array<i32: 1>} : vector<32x128xi32>
    %c128_i32 = arith.constant 128 : i32
    %21 = arith.muli %arg0, %c128_i32 : i32
    %22 = vector.broadcast %21 : i32 to vector<32x128xi32>
    %23 = arith.addi %20, %22 : vector<32x128xi32>
    %c16_i32 = arith.constant 16 : i32
    %24 = vector.broadcast %c16_i32 : i32 to vector<32x128xi32>
    %25 = arith.cmpi slt, %23, %24 : vector<32x128xi32>
    %cst_19 = arith.constant 0.000000e+00 : f32
    %26 = vector.broadcast %cst_19 : f32 to vector<32x128xf32>
    %27 = arith.select %25, %15, %26 : vector<32x128xi1>, vector<32x128xf32>
    %c0_20 = arith.constant 0 : index
    %c0_21 = arith.constant 0 : index
    %28 = vector.load %arg11[%c0_20, %c0_21] : memref<32x1xf32, #tpu.memory_space<vmem>>, vector<32x1xf32>
    %cst_22 = arith.constant dense<0.000000e+00> : vector<32xf32>
    %29 = vector.multi_reduction <add>, %27, %cst_22 [1] : vector<32x128xf32> to vector<32xf32>
    %30 = vector.shape_cast %29 : vector<32xf32> to vector<32x1xf32>
    %31 = arith.addf %28, %30 : vector<32x1xf32>
    %c0_23 = arith.constant 0 : index
    %c0_24 = arith.constant 0 : index
    %32 = vector.load %arg11[%c0_23, %c0_24] : memref<32x1xf32, #tpu.memory_space<vmem>>, vector<32x1xf32>
    tpu.vector_store %arg11[%c0_23, %c0_24], %31 {strides = array<i32>} : memref<32x1xf32, #tpu.memory_space<vmem>>, vector<32x1xf32>,
    %c0_25 = arith.constant 0 : index
    %c0_26 = arith.constant 0 : index
    %33 = vector.load %arg12[%c0_25, %c0_26] : memref<32x1xf32, #tpu.memory_space<vmem>>, vector<32x1xf32>
    %34 = arith.mulf %27, %27 : vector<32x128xf32>
    %cst_27 = arith.constant dense<0.000000e+00> : vector<32xf32>
    %35 = vector.multi_reduction <add>, %34, %cst_27 [1] : vector<32x128xf32> to vector<32xf32>
    %36 = vector.shape_cast %35 : vector<32xf32> to vector<32x1xf32>
    %37 = arith.addf %33, %36 : vector<32x1xf32>
    %c0_28 = arith.constant 0 : index
    %c0_29 = arith.constant 0 : index
    %38 = vector.load %arg12[%c0_28, %c0_29] : memref<32x1xf32, #tpu.memory_space<vmem>>, vector<32x1xf32>
    tpu.vector_store %arg12[%c0_28, %c0_29], %37 {strides = array<i32>} : memref<32x1xf32, #tpu.memory_space<vmem>>, vector<32x1xf32>,
    %c0_i32_30 = arith.constant 0 : i32
    %39 = arith.cmpi eq, %arg0, %c0_i32_30 : i32
    %40 = arith.extui %39 : i1 to i32
    %c0_i32_31 = arith.constant 0 : i32
    %41 = arith.cmpi ne, %40, %c0_i32_31 : i32
    scf.if %41 {
      %c0_32 = arith.constant 0 : index
      %c0_33 = arith.constant 0 : index
      %42 = vector.load %arg11[%c0_32, %c0_33] : memref<32x1xf32, #tpu.memory_space<vmem>>, vector<32x1xf32>
      %c0_34 = arith.constant 0 : index
      %c0_35 = arith.constant 0 : index
      %43 = vector.load %arg9[%c0_34, %c0_35] : memref<32x1xf32, #tpu.memory_space<vmem>>, vector<32x1xf32>
      tpu.vector_store %arg9[%c0_34, %c0_35], %42 {strides = array<i32>} : memref<32x1xf32, #tpu.memory_space<vmem>>, vector<32x1xf32>,
      %c0_36 = arith.constant 0 : index
      %c0_37 = arith.constant 0 : index
      %44 = vector.load %arg12[%c0_36, %c0_37] : memref<32x1xf32, #tpu.memory_space<vmem>>, vector<32x1xf32>
      %c0_38 = arith.constant 0 : index
      %c0_39 = arith.constant 0 : index
      %45 = vector.load %arg10[%c0_38, %c0_39] : memref<32x1xf32, #tpu.memory_space<vmem>>, vector<32x1xf32>
      tpu.vector_store %arg10[%c0_38, %c0_39], %44 {strides = array<i32>} : memref<32x1xf32, #tpu.memory_space<vmem>>, vector<32x1xf32>,
    } else {
    }
    return
  }
  func.func @transform_0(%arg0: i32) -> (i32, i32) {
    %c0_i32 = arith.constant 0 : i32
    %c0_i32_0 = arith.constant 0 : i32
    return %c0_i32, %arg0 : i32, i32
  }
  func.func @transform_1(%arg0: i32) -> (i32, i32) {
    %c0_i32 = arith.constant 0 : i32
    %c0_i32_0 = arith.constant 0 : i32
    return %c0_i32, %arg0 : i32, i32
  }
  func.func @transform_2(%arg0: i32) -> (i32, i32) {
    %c0_i32 = arith.constant 0 : i32
    %c0_i32_0 = arith.constant 0 : i32
    return %c0_i32, %arg0 : i32, i32
  }
  func.func @transform_3(%arg0: i32) -> (i32, i32) {
    %c0_i32 = arith.constant 0 : i32
    %c0_i32_0 = arith.constant 0 : i32
    return %c0_i32, %arg0 : i32, i32
  }
  func.func @transform_4(%arg0: i32) -> (i32, i32) {
    %c0_i32 = arith.constant 0 : i32
    %c0_i32_0 = arith.constant 0 : i32
    %c0_i32_1 = arith.constant 0 : i32
    return %c0_i32, %c0_i32_0 : i32, i32
  }
  func.func @transform_5(%arg0: i32) -> (i32, i32) {
    %c0_i32 = arith.constant 0 : i32
    %c0_i32_0 = arith.constant 0 : i32
    %c0_i32_1 = arith.constant 0 : i32
    return %c0_i32, %c0_i32_0 : i32, i32
  }
  func.func @transform_6(%arg0: i32) -> (i32, i32) {
    %c0_i32 = arith.constant 0 : i32
    %c0_i32_0 = arith.constant 0 : i32
    %c0_i32_1 = arith.constant 0 : i32
    return %c0_i32, %c0_i32_0 : i32, i32
  }
  func.func @transform_7(%arg0: i32) -> (i32, i32) {
    %c0_i32 = arith.constant 0 : i32
    %c0_i32_0 = arith.constant 0 : i32
    return %c0_i32, %arg0 : i32, i32
  }
  func.func @transform_8(%arg0: i32) -> (i32, i32) {
    %c0_i32 = arith.constant 0 : i32
    %c0_i32_0 = arith.constant 0 : i32
    %c0_i32_1 = arith.constant 0 : i32
    return %c0_i32, %c0_i32_0 : i32, i32
  }
  func.func @transform_9(%arg0: i32) -> (i32, i32) {
    %c0_i32 = arith.constant 0 : i32
    %c0_i32_0 = arith.constant 0 : i32
    %c0_i32_1 = arith.constant 0 : i32
    return %c0_i32, %c0_i32_0 : i32, i32
  }
}

module attributes {stable_mosaic.version = 11 : i64} {
  func.func @_norm_act_kernel(%arg0: i32, %arg1: memref<32x128xf32, #tpu.memory_space<vmem>>, %arg2: memref<32x1xf32, #tpu.memory_space<vmem>>, %arg3: memref<32x1xf32, #tpu.memory_space<vmem>>, %arg4: memref<32x128xbf16, #tpu.memory_space<vmem>>) attributes {dimension_semantics = [#tpu.dimension_semantics<parallel>], iteration_bounds = array<i64: 1>, scalar_prefetch = 0 : i64, scratch_operands = 0 : i64, tpu.core_type = #tpu.core_type<tc>, window_params = [{transform_indices = @transform_0, window_bounds = array<i64: 32, 128>}, {pipeline_mode = #tpu.pipeline_mode<synchronous>, transform_indices = @transform_1, window_bounds = array<i64: 32, 1>}, {pipeline_mode = #tpu.pipeline_mode<synchronous>, transform_indices = @transform_2, window_bounds = array<i64: 32, 1>}, {transform_indices = @transform_3, window_bounds = array<i64: 32, 128>}]} {
    %c0 = arith.constant 0 : index
    %c0_0 = arith.constant 0 : index
    %0 = vector.load %arg1[%c0, %c0_0] : memref<32x128xf32, #tpu.memory_space<vmem>>, vector<32x128xf32>
    %c0_1 = arith.constant 0 : index
    %c0_2 = arith.constant 0 : index
    %1 = vector.load %arg2[%c0_1, %c0_2] : memref<32x1xf32, #tpu.memory_space<vmem>>, vector<32x1xf32>
    %2 = vector.broadcast %1 : vector<32x1xf32> to vector<32x128xf32>
    %3 = arith.subf %0, %2 : vector<32x128xf32>
    %c0_3 = arith.constant 0 : index
    %c0_4 = arith.constant 0 : index
    %4 = vector.load %arg3[%c0_3, %c0_4] : memref<32x1xf32, #tpu.memory_space<vmem>>, vector<32x1xf32>
    %5 = vector.broadcast %4 : vector<32x1xf32> to vector<32x128xf32>
    %6 = arith.mulf %3, %5 : vector<32x128xf32>
    %cst = arith.constant 0.000000e+00 : f32
    %7 = vector.broadcast %cst : f32 to vector<32x128xf32>
    %8 = arith.cmpf oge, %6, %7 : vector<32x128xf32>
    %cst_5 = arith.constant 2.000000e-01 : f32
    %9 = vector.broadcast %cst_5 : f32 to vector<32x128xf32>
    %10 = arith.mulf %9, %6 : vector<32x128xf32>
    %11 = arith.select %8, %6, %10 : vector<32x128xi1>, vector<32x128xf32>
    %12 = arith.truncf %11 : vector<32x128xf32> to vector<32x128xbf16>
    %c0_6 = arith.constant 0 : index
    %c0_7 = arith.constant 0 : index
    %13 = vector.load %arg4[%c0_6, %c0_7] : memref<32x128xbf16, #tpu.memory_space<vmem>>, vector<32x128xbf16>
    tpu.vector_store %arg4[%c0_6, %c0_7], %12 {strides = array<i32>} : memref<32x128xbf16, #tpu.memory_space<vmem>>, vector<32x128xbf16>,
    return
  }
  func.func @transform_0(%arg0: i32) -> (i32, i32) {
    %c0_i32 = arith.constant 0 : i32
    %c0_i32_0 = arith.constant 0 : i32
    return %c0_i32, %arg0 : i32, i32
  }
  func.func @transform_1(%arg0: i32) -> (i32, i32) {
    %c0_i32 = arith.constant 0 : i32
    %c0_i32_0 = arith.constant 0 : i32
    %c0_i32_1 = arith.constant 0 : i32
    return %c0_i32, %c0_i32_0 : i32, i32
  }
  func.func @transform_2(%arg0: i32) -> (i32, i32) {
    %c0_i32 = arith.constant 0 : i32
    %c0_i32_0 = arith.constant 0 : i32
    %c0_i32_1 = arith.constant 0 : i32
    return %c0_i32, %c0_i32_0 : i32, i32
  }
  func.func @transform_3(%arg0: i32) -> (i32, i32) {
    %c0_i32 = arith.constant 0 : i32
    %c0_i32_0 = arith.constant 0 : i32
    return %c0_i32, %arg0 : i32, i32
  }
}

module attributes {stable_mosaic.version = 11 : i64} {
  func.func @_conv_max_kernel(%arg0: i32, %arg1: memref<32x128xbf16, #tpu.memory_space<vmem>>, %arg2: memref<32x128xbf16, #tpu.memory_space<vmem>>, %arg3: memref<32x128xbf16, #tpu.memory_space<vmem>>, %arg4: memref<32x128xbf16, #tpu.memory_space<vmem>>, %arg5: memref<8x32xbf16, #tpu.memory_space<vmem>>, %arg6: memref<8x32xbf16, #tpu.memory_space<vmem>>, %arg7: memref<8x1xf32, #tpu.memory_space<vmem>>, %arg8: memref<8x128xf32, #tpu.memory_space<vmem>>) attributes {dimension_semantics = [#tpu.dimension_semantics<parallel>], iteration_bounds = array<i64: 1>, scalar_prefetch = 0 : i64, scratch_operands = 0 : i64, tpu.core_type = #tpu.core_type<tc>, window_params = [{transform_indices = @transform_0, window_bounds = array<i64: 32, 128>}, {transform_indices = @transform_1, window_bounds = array<i64: 32, 128>}, {transform_indices = @transform_2, window_bounds = array<i64: 32, 128>}, {transform_indices = @transform_3, window_bounds = array<i64: 32, 128>}, {pipeline_mode = #tpu.pipeline_mode<synchronous>, transform_indices = @transform_4, window_bounds = array<i64: 8, 32>}, {pipeline_mode = #tpu.pipeline_mode<synchronous>, transform_indices = @transform_5, window_bounds = array<i64: 8, 32>}, {pipeline_mode = #tpu.pipeline_mode<synchronous>, transform_indices = @transform_6, window_bounds = array<i64: 8, 1>}, {transform_indices = @transform_7, window_bounds = array<i64: 8, 128>}]} {
    %c0 = arith.constant 0 : index
    %c0_0 = arith.constant 0 : index
    %0 = vector.load %arg5[%c0, %c0_0] : memref<8x32xbf16, #tpu.memory_space<vmem>>, vector<8x32xbf16>
    %c0_1 = arith.constant 0 : index
    %c0_2 = arith.constant 0 : index
    %1 = vector.load %arg1[%c0_1, %c0_2] : memref<32x128xbf16, #tpu.memory_space<vmem>>, vector<32x128xbf16>
    %cst = arith.constant dense<0.000000e+00> : vector<8x128xf32>
    %2 = tpu.matmul %0, %1, %cst {dimension_numbers = #tpu.dot_dimension_numbers<[1], [0], [0], [1], [0, 0, 1, 1], [], []>} : vector<8x32xbf16>, vector<32x128xbf16>, vector<8x128xf32> -> vector<8x128xf32>
    %c0_3 = arith.constant 0 : index
    %c0_4 = arith.constant 0 : index
    %3 = vector.load %arg2[%c0_3, %c0_4] : memref<32x128xbf16, #tpu.memory_space<vmem>>, vector<32x128xbf16>
    %cst_5 = arith.constant dense<0.000000e+00> : vector<8x128xf32>
    %4 = tpu.matmul %0, %3, %cst_5 {dimension_numbers = #tpu.dot_dimension_numbers<[1], [0], [0], [1], [0, 0, 1, 1], [], []>} : vector<8x32xbf16>, vector<32x128xbf16>, vector<8x128xf32> -> vector<8x128xf32>
    %5 = arith.maximumf %2, %4 : vector<8x128xf32>
    %c0_6 = arith.constant 0 : index
    %c0_7 = arith.constant 0 : index
    %6 = vector.load %arg3[%c0_6, %c0_7] : memref<32x128xbf16, #tpu.memory_space<vmem>>, vector<32x128xbf16>
    %cst_8 = arith.constant dense<0.000000e+00> : vector<8x128xf32>
    %7 = tpu.matmul %0, %6, %cst_8 {dimension_numbers = #tpu.dot_dimension_numbers<[1], [0], [0], [1], [0, 0, 1, 1], [], []>} : vector<8x32xbf16>, vector<32x128xbf16>, vector<8x128xf32> -> vector<8x128xf32>
    %8 = arith.maximumf %5, %7 : vector<8x128xf32>
    %c0_9 = arith.constant 0 : index
    %c0_10 = arith.constant 0 : index
    %9 = vector.load %arg6[%c0_9, %c0_10] : memref<8x32xbf16, #tpu.memory_space<vmem>>, vector<8x32xbf16>
    %c0_11 = arith.constant 0 : index
    %c0_12 = arith.constant 0 : index
    %10 = vector.load %arg4[%c0_11, %c0_12] : memref<32x128xbf16, #tpu.memory_space<vmem>>, vector<32x128xbf16>
    %cst_13 = arith.constant dense<0.000000e+00> : vector<8x128xf32>
    %11 = tpu.matmul %9, %10, %cst_13 {dimension_numbers = #tpu.dot_dimension_numbers<[1], [0], [0], [1], [0, 0, 1, 1], [], []>} : vector<8x32xbf16>, vector<32x128xbf16>, vector<8x128xf32> -> vector<8x128xf32>
    %12 = arith.addf %8, %11 : vector<8x128xf32>
    %c0_14 = arith.constant 0 : index
    %c0_15 = arith.constant 0 : index
    %13 = vector.load %arg7[%c0_14, %c0_15] : memref<8x1xf32, #tpu.memory_space<vmem>>, vector<8x1xf32>
    %14 = vector.broadcast %13 : vector<8x1xf32> to vector<8x128xf32>
    %15 = arith.addf %12, %14 : vector<8x128xf32>
    %c0_16 = arith.constant 0 : index
    %c0_17 = arith.constant 0 : index
    %16 = vector.load %arg8[%c0_16, %c0_17] : memref<8x128xf32, #tpu.memory_space<vmem>>, vector<8x128xf32>
    tpu.vector_store %arg8[%c0_16, %c0_17], %15 {strides = array<i32>} : memref<8x128xf32, #tpu.memory_space<vmem>>, vector<8x128xf32>,
    return
  }
  func.func @transform_0(%arg0: i32) -> (i32, i32) {
    %c0_i32 = arith.constant 0 : i32
    %c0_i32_0 = arith.constant 0 : i32
    return %c0_i32, %arg0 : i32, i32
  }
  func.func @transform_1(%arg0: i32) -> (i32, i32) {
    %c0_i32 = arith.constant 0 : i32
    %c0_i32_0 = arith.constant 0 : i32
    return %c0_i32, %arg0 : i32, i32
  }
  func.func @transform_2(%arg0: i32) -> (i32, i32) {
    %c0_i32 = arith.constant 0 : i32
    %c0_i32_0 = arith.constant 0 : i32
    return %c0_i32, %arg0 : i32, i32
  }
  func.func @transform_3(%arg0: i32) -> (i32, i32) {
    %c0_i32 = arith.constant 0 : i32
    %c0_i32_0 = arith.constant 0 : i32
    return %c0_i32, %arg0 : i32, i32
  }
  func.func @transform_4(%arg0: i32) -> (i32, i32) {
    %c0_i32 = arith.constant 0 : i32
    %c0_i32_0 = arith.constant 0 : i32
    %c0_i32_1 = arith.constant 0 : i32
    return %c0_i32, %c0_i32_0 : i32, i32
  }
  func.func @transform_5(%arg0: i32) -> (i32, i32) {
    %c0_i32 = arith.constant 0 : i32
    %c0_i32_0 = arith.constant 0 : i32
    %c0_i32_1 = arith.constant 0 : i32
    return %c0_i32, %c0_i32_0 : i32, i32
  }
  func.func @transform_6(%arg0: i32) -> (i32, i32) {
    %c0_i32 = arith.constant 0 : i32
    %c0_i32_0 = arith.constant 0 : i32
    %c0_i32_1 = arith.constant 0 : i32
    return %c0_i32, %c0_i32_0 : i32, i32
  }
  func.func @transform_7(%arg0: i32) -> (i32, i32) {
    %c0_i32 = arith.constant 0 : i32
    %c0_i32_0 = arith.constant 0 : i32
    return %c0_i32, %arg0 : i32, i32
  }
}

</mosaic_0001>

<bundles_post_ra>
// kernel: multi_mesh_conv.5
= control target key start
LH: loop header
LB: loop body
LE: loop exit
PB: predicated region body
PF: predicated region fallthrough
CT: control target
= control target key end

     0   :  { %v184_v0 = vmov 1   ;;  %v185_v1 = vmov 0   ;;  %v186_v3 = vmov 2   ;;  %vm117_vm0 = vcmask 7168   ;;  %s279_s3 = inlined_call_operand.vmem [shape: f32[16,3], index: 3, kind: input, shape index: {}]   ;;  %s280_s4 = inlined_call_operand.vmem [shape: f32[16,1], index: 4, kind: input, shape index: {}]   ;;  %s281_s0 = inlined_call_operand.vmem [shape: f32[3,128], index: 0, kind: input, shape index: {}]   ;;  %s282_s1 = inlined_call_operand.vmem [shape: f32[3,128], index: 1, kind: input, shape index: {}]   ;;  %s283_s2 = inlined_call_operand.vmem [shape: f32[3,128], index: 2, kind: input, shape index: {}]   ;;  %s284_s5 = inlined_call_operand.vmem [shape: f32[16,128], index: 5, kind: output, shape index: {0}]   ;;  %s285_s6 = inlined_call_operand.vmem [shape: f32[16,1], index: 6, kind: output, shape index: {1}]   ;;  %s286_s7 = inlined_call_operand.vmem [shape: f32[16,1], index: 7, kind: output, shape index: {2}]  }
   0x1   :  { %181 = vset.pattern.permute.xlu1 %v184_v0  ;;  %180 = vset.pattern.permute.xlu0 %v185_v1  ;;  %v23_v2 = vld [vmem:[%s279_s3] sm:$0xff]  ;;  %v24_v4 = vld [vmem:[%s279_s3 + $0x8] sm:$0xff]  ;;  %v187_v14 = vmov 0.0   ;;  %v122_v40 = vlaneseq }
   0x2   :  { %40 = vperm.xlu1 %181, %v23_v2   ;;  %28 = vperm.xlu0 %180, %v23_v2   ;;  %v97_v5 = vld [vmem:[%s280_s4] sm:$0xff]  ;;  %v98_v6 = vld [vmem:[%s280_s4 + $0x8] sm:$0xff]  ;;  %118 = vst.msk [vmem:[#allocation2] sm:$0xff] %vm117_vm0, %v187_v14 }
   0x3   :  { %182 = vset.pattern.permute.xlu2 %v186_v3  ;;  %v25_v7 = vld [vmem:[%s281_s0] sm:$0x7]  ;;  %119 = vst.msk [vmem:[#allocation2 + $0x8] sm:$0xff] %vm117_vm0, %v187_v14  ;;  %v123_v53 = vand.u32 127, %v122_v40 }
   0x4   :  { %53 = vperm.xlu2 %182, %v23_v2   ;;  %v65_v8 = vld [vmem:[%s282_s1] sm:$0x7]  ;;  %v47_v11 = vperm.slane %v25_v7, 1  ;;  %v36_v13 = vperm.slane %v25_v7, 0  ;;  %v60_v16 = vperm.slane %v25_v7, 2  ;;  %120 = vst.msk [vmem:[#allocation3] sm:$0xff] %vm117_vm0, %v187_v14 }
   0x5   :  { %v81_v10 = vld [vmem:[%s283_s2] sm:$0x7]  ;;  %v69_v12 = vperm.slane %v65_v8, 1  ;;  %v66_v15 = vperm.slane %v65_v8, 0  ;;  %v74_v17 = vperm.slane %v65_v8, 2  ;;  %121 = vst.msk [vmem:[#allocation3 + $0x8] sm:$0xff] %vm117_vm0, %v187_v14 }
   0x6   :  { %v85_v19 = vperm.slane %v81_v10, 1  ;;  %v82_v21 = vperm.slane %v81_v10, 0  ;;  %v90_v29 = vperm.slane %v81_v10, 2  ;;  %vm127_vm1 = vcmp.lt.s32.totalorder %v123_v53, 16 }
   0xa   :  { %44 = vperm.xlu1 %181, %v24_v4   ;;  %33 = vperm.xlu0 %180, %v24_v4   ;;  %v131_v10 = vld [vmem:[#allocation2 + $0x8] sm:$0xff] }
   0xb   :  { %v141_v8 = vld [vmem:[#allocation3] sm:$0xff] }
   0xc   :  { %57 = vperm.xlu2 %182, %v24_v4  }
  0x12   :  { %101 = vperm.xlu0 %180, %v97_v5   ;;  %183 = vset.pattern.permute.xlu1 %v185_v1 }
  0x13   :  { %106 = vperm.xlu1 %183, %v98_v6   ;;  %v130_v6 = vld [vmem:[#allocation2] sm:$0xff] }
  0x5e   :  { %v54_v9 = vpop.permute.xlu2 %53 }
  0x5f   :  { %v61_v26 = vmul.f32 %v60_v16, %v54_v9  ;;  %v75_v27 = vmul.f32 %v74_v17, %v54_v9  ;;  %v91_v36 = vmul.f32 %v90_v29, %v54_v9 }
  0x66   :  { %v58_v33 = vpop.permute.xlu2 %57 }
  0x67   :  { %v62_v47 = vmul.f32 %v60_v16, %v58_v33  ;;  %v76_v50 = vmul.f32 %v74_v17, %v58_v33  ;;  %v92_v56 = vmul.f32 %v90_v29, %v58_v33 }
  0x74   :  { %v41_v18 = vpop.permute.xlu1 %40  ;;  %v29_v20 = vpop.permute.xlu0 %28 }
  0x75   :  { %v48_v22 = vmul.f32 %v47_v11, %v41_v18  ;;  %v70_v23 = vmul.f32 %v69_v12, %v41_v18  ;;  %v37_v24 = vmul.f32 %v36_v13, %v29_v20  ;;  %v67_v25 = vmul.f32 %v66_v15, %v29_v20 }
  0x76   :  { %v86_v30 = vmul.f32 %v85_v19, %v41_v18  ;;  %v83_v32 = vmul.f32 %v82_v21, %v29_v20 }
  0x77   :  { %v50_v28 = vadd.f32 %v48_v22, %v37_v24  ;;  %v72_v31 = vadd.f32 %v70_v23, %v67_v25 }
  0x78   :  { %v88_v37 = vadd.f32 %v86_v30, %v83_v32 }
  0x79   :  { %v63_v34 = vadd.f32 %v61_v26, %v50_v28  ;;  %v77_v35 = vadd.f32 %v75_v27, %v72_v31 }
  0x7a   :  { %v93_v54 = vadd.f32 %v91_v36, %v88_v37 }
  0x7b   :  { %v79_v49 = vmax.f32 %v63_v34, %v77_v35 }
  0x7c   :  { %v45_v38 = vpop.permute.xlu1 %44  ;;  %v34_v39 = vpop.permute.xlu0 %33 }
  0x7d   :  { %v49_v41 = vmul.f32 %v47_v11, %v45_v38  ;;  %v71_v42 = vmul.f32 %v69_v12, %v45_v38  ;;  %v87_v43 = vmul.f32 %v85_v19, %v45_v38  ;;  %v38_v44 = vmul.f32 %v36_v13, %v34_v39 }
  0x7e   :  { %v68_v45 = vmul.f32 %v66_v15, %v34_v39  ;;  %v84_v46 = vmul.f32 %v82_v21, %v34_v39  ;;  %v95_v58 = vmax.f32 %v79_v49, %v93_v54  ;;  %v142_v15 = vld [vmem:[#allocation3 + $0x8] sm:$0xff] }
  0x7f   :  { %v51_v48 = vadd.f32 %v49_v41, %v38_v44 }
  0x80   :  { %v73_v51 = vadd.f32 %v71_v42, %v68_v45  ;;  %v89_v52 = vadd.f32 %v87_v43, %v84_v46 }
  0x81   :  { %v64_v55 = vadd.f32 %v62_v47, %v51_v48 }
  0x82   :  { %v78_v57 = vadd.f32 %v76_v50, %v73_v51  ;;  %v94_v61 = vadd.f32 %v92_v56, %v89_v52 }
  0x84   :  { %v102_v59 = vpop.permute.xlu0 %101  ;;  %v80_v60 = vmax.f32 %v64_v55, %v78_v57 }
  0x85   :  { %v109_v62 = vadd.f32 %v102_v59, %v95_v58  ;;  %v107_v63 = vpop.permute.xlu1 %106 }
  0x86   :  { %v96_v0 = vmax.f32 %v80_v60, %v94_v61 }
  0x87   :  { %111 = vst [vmem:[%s284_s5] sm:$0xff] %v109_v62  ;;  %v128_v1 = vsel %vm127_vm1, %v109_v62, 0.0 }
  0x88   :  { %v110_v2 = vadd.f32 %v107_v63, %v96_v0  ;;  %132 = vadd.xlane.f32.xlu2 %v128_v1  ;;  %v143_v3 = vmul.f32 %v128_v1, %v128_v1 }
  0x8a   :  { %112 = vst [vmem:[%s284_s5 + $0x8] sm:$0xff] %v110_v2  ;;  %v129_v4 = vsel %vm127_vm1, %v110_v2, 0.0  ;;  %145 = vadd.xlane.f32.xlu1 %v143_v3 }
  0x8b   :  { %134 = vadd.xlane.f32.xlu0 %v129_v4  ;;  %v144_v5 = vmul.f32 %v129_v4, %v129_v4 }
  0x90   :  { %147 = vadd.xlane.f32.xlu2 %v144_v5 }
  0xfb   :  { %v133_v7 = vpop.xlane.xlu2 %132 }
  0xfc   :  { %v136_v9 = vadd.f32 %v133_v7, %v130_v6 }
  0xfd   :  { %v146_v11 = vpop.xlane.xlu1 %145 }
  0xfe   :  { %139 = vst.msk [vmem:[#allocation2] sm:$0xff] %vm117_vm0, %v136_v9  ;;  %v135_v12 = vpop.xlane.xlu0 %134  ;;  %v149_v13 = vadd.f32 %v146_v11, %v141_v8 }
  0xff   :  { %v137_v14 = vadd.f32 %v135_v12, %v131_v10 }
 0x100   :  { %151 = vst.msk [vmem:[#allocation3] sm:$0xff] %vm117_vm0, %v149_v13 }
 0x101   :  { %140 = vst.msk [vmem:[#allocation2 + $0x8] sm:$0xff] %vm117_vm0, %v137_v14 }
 0x103   :  { %v148_v16 = vpop.xlane.xlu2 %147 }
 0x104   :  { %v150_v17 = vadd.f32 %v148_v16, %v142_v15 }
 0x105   :  { %v156_v18 = vld [vmem:[#allocation2] sm:$0xff] }
 0x106   :  { %158 = vst.msk [vmem:[%s285_s6] sm:$0xff] %vm117_vm0, %v156_v18 }
 0x107   :  { %v160_v19 = vld [vmem:[#allocation3] sm:$0xff]  ;;  %152 = vst.msk [vmem:[#allocation3 + $0x8] sm:$0xff] %vm117_vm0, %v150_v17 }
 0x108   :  { %v157_v20 = vld [vmem:[#allocation2 + $0x8] sm:$0xff]  ;;  %162 = vst.msk [vmem:[%s286_s7] sm:$0xff] %vm117_vm0, %v160_v19 }
 0x109   :  { %159 = vst.msk [vmem:[%s285_s6 + $0x8] sm:$0xff] %vm117_vm0, %v157_v20 }
 0x10e   :  { %v161_v21 = vld [vmem:[#allocation3 + $0x8] sm:$0xff] }
 0x10f   :  { %163 = vst.msk [vmem:[%s286_s7 + $0x8] sm:$0xff] %vm117_vm0, %v161_v21 }

// kernel: multi_mesh_conv.6
= control target key start
LH: loop header
LB: loop body
LE: loop exit
PB: predicated region body
PF: predicated region fallthrough
CT: control target
= control target key end

     0   :  { %v66_v0 = vmov 0   ;;  %s108_s2 = inlined_call_operand.vmem [shape: f32[16,1], index: 2, kind: input, shape index: {}]   ;;  %s109_s1 = inlined_call_operand.vmem [shape: f32[16,1], index: 1, kind: input, shape index: {}]   ;;  %s110_s0 = inlined_call_operand.vmem [shape: f32[16,128], index: 0, kind: input, shape index: {}]   ;;  %s111_s3 = inlined_call_operand.vmem [shape: bf16[16,128], index: 3, kind: output, shape index: {}]  }
   0x1   :  { %65 = vset.pattern.permute.xlu1 %v66_v0  ;;  %64 = vset.pattern.permute.xlu0 %v66_v0  ;;  %v30_v1 = vld [vmem:[%s108_s2] sm:$0xff]  ;;  %v31_v3 = vld [vmem:[%s108_s2 + $0x8] sm:$0xff] }
   0x2   :  { %v16_v2 = vld [vmem:[%s109_s1] sm:$0xff]  ;;  %34 = vperm.xlu1 %65, %v30_v1   ;;  %v17_v4 = vld [vmem:[%s109_s1 + $0x8] sm:$0xff] }
   0x3   :  { %20 = vperm.xlu0 %64, %v16_v2   ;;  %v14_v7 = vld [vmem:[%s110_s0] sm:$0xff]  ;;  %v15_v9 = vld [vmem:[%s110_s0 + $0x8] sm:$0xff] }
   0xa   :  { %39 = vperm.xlu1 %65, %v31_v3  }
   0xb   :  { %25 = vperm.xlu0 %64, %v17_v4  }
  0x74   :  { %v35_v5 = vpop.permute.xlu1 %34 }
  0x75   :  { %v21_v6 = vpop.permute.xlu0 %20 }
  0x76   :  { %v28_v8 = vsub.f32 %v14_v7, %v21_v6 }
  0x78   :  { %v42_v10 = vmul.f32 %v35_v5, %v28_v8 }
  0x7a   :  { %v46_v14 = vmul.f32 0.2, %v42_v10  ;;  %vm44_vm0 = vcmp.ge.f32.partialorder %v42_v10, 0.0 }
  0x7c   :  { %v40_v13 = vpop.permute.xlu1 %39  ;;  %v48_v17 = vsel %vm44_vm0, %v42_v10, %v46_v14 }
  0x7d   :  { %v26_v11 = vpop.permute.xlu0 %25 }
  0x7e   :  { %v29_v12 = vsub.f32 %v15_v9, %v26_v11 }
  0x80   :  { %v43_v15 = vmul.f32 %v40_v13, %v29_v12 }
  0x82   :  { %vm45_vm1 = vcmp.ge.f32.partialorder %v43_v15, 0.0  ;;  %v47_v16 = vmul.f32 0.2, %v43_v15 }
  0x84   :  { %v49_v18 = vsel %vm45_vm1, %v43_v15, %v47_v16 }
  0x85   :  { %v61_v19 = vpack.c.bf16 %v49_v18, %v48_v17 }
  0x87   :  { %62 = vst [vmem:[%s111_s3] sm:$0xff] %v61_v19  }

// kernel: multi_mesh_conv.7
= control target key start
LH: loop header
LB: loop body
LE: loop exit
PB: predicated region body
PF: predicated region fallthrough
CT: control target
= control target key end

     0   :  { %v374_v3 = vmov 0   ;;  %vm52_vm0 = vcmask 130048   ;;  %v236_v15 = vlaneseq  ;;  %vm227_vm2 = vcmask 7168   ;;  %s534_s0 = inlined_call_operand.vmem [shape: bf16[16,128], index: 0, kind: input, shape index: {}]   ;;  %s535_s1 = inlined_call_operand.vmem [shape: bf16[16,128], index: 1, kind: input, shape index: {}]   ;;  %s536_s2 = inlined_call_operand.vmem [shape: bf16[16,128], index: 2, kind: input, shape index: {}]   ;;  %s537_s3 = inlined_call_operand.vmem [shape: bf16[16,128], index: 3, kind: input, shape index: {}]   ;;  %s538_s4 = inlined_call_operand.vmem [shape: bf16[32,16], index: 4, kind: input, shape index: {}]   ;;  %s539_s5 = inlined_call_operand.vmem [shape: bf16[32,16], index: 5, kind: input, shape index: {}]   ;;  %s540_s6 = inlined_call_operand.vmem [shape: f32[32,1], index: 6, kind: input, shape index: {}]   ;;  %s541_s7 = inlined_call_operand.vmem [shape: f32[32,128], index: 7, kind: output, shape index: {0}]   ;;  %s542_s8 = inlined_call_operand.vmem [shape: f32[32,1], index: 8, kind: output, shape index: {1}]   ;;  %s543_s9 = inlined_call_operand.vmem [shape: f32[32,1], index: 9, kind: output, shape index: {2}]  }
   0x1   :  { %v364_v0 = vld [vmem:[%s534_s0] sm:$0xff]  ;;  %372 = vset.pattern.permute.xlu0 %v374_v3  ;;  %373 = vset.pattern.permute.xlu1 %v374_v3  ;;  %v193_v8 = vld [vmem:[%s540_s6 + $0x10] sm:$0xff]  ;;  %v192_v9 = vld [vmem:[%s540_s6 + $0x8] sm:$0xff]  ;;  %v375_v42 = vmov 0.0  }
   0x2   :  { %v365_v1 = vld [vmem:[%s535_s1] sm:$0xff]  ;;  %66 = vmatpush.bf16.msra.mxu0 %v364_v0  ;;  %207 = vperm.xlu1 %373, %v193_v8   ;;  %v194_v10 = vld [vmem:[%s540_s6 + $0x18] sm:$0xff]  ;;  %v363_v11 = vld [vmem:[%s538_s4 + $0x8] sm:$0xff]  ;;  %v237_v19 = vand.u32 127, %v236_v15  ;;  %228 = vst.msk [vmem:[#allocation2] sm:$0xff] %vm227_vm2, %v375_v42 }
   0x3   :  { %v366_v2 = vld [vmem:[%s536_s2] sm:$0xff]  ;;  %93 = vmatpush.bf16.msra.mxu1 %v365_v1  ;;  %v368_v12 = vld [vmem:[%s539_s5 + $0x8] sm:$0xff]  ;;  %229 = vst.msk [vmem:[#allocation2 + $0x8] sm:$0xff] %vm227_vm2, %v375_v42 }
   0x4   :  { %v369_v4 = vld [vmem:[%s537_s3] sm:$0xff]  ;;  %124 = vmatpush.bf16.msra.mxu2 %v366_v2  ;;  %vm241_vm1 = vcmp.lt.s32.totalorder %v237_v19, 16  ;;  %230 = vst.msk [vmem:[#allocation2 + $0x10] sm:$0xff] %vm227_vm2, %v375_v42 }
   0x5   :  { %v362_v5 = vld [vmem:[%s538_s4] sm:$0xff]  ;;  %175 = vmatpush.bf16.msra.mxu3 %v369_v4  ;;  %231 = vst.msk [vmem:[#allocation2 + $0x18] sm:$0xff] %vm227_vm2, %v375_v42 }
   0x6   :  { %v367_v6 = vld [vmem:[%s539_s5] sm:$0xff]  ;;  %334 = vmatmul.msk.bf16.vlgmr.msra.gmra.mxu0 %vm52_vm0, %v362_v5  ;;  %340 = vmatmul.msk.bf16.vlgmr.msra.gmra.mxu1 %vm52_vm0, %v362_v5  ;;  %232 = vst.msk [vmem:[#allocation3] sm:$0xff] %vm227_vm2, %v375_v42 }
   0x7   :  { %v191_v7 = vld [vmem:[%s540_s6] sm:$0xff]  ;;  %346 = vmatmul.msk.bf16.vlgmr.msra.gmra.mxu2 %vm52_vm0, %v362_v5  ;;  %233 = vst.msk [vmem:[#allocation3 + $0x8] sm:$0xff] %vm227_vm2, %v375_v42 }
   0x8   :  { %197 = vperm.xlu0 %372, %v191_v7   ;;  %360 = vmatmul.msk.bf16.vlgmr.msra.gmra.mxu3 %vm52_vm0, %v367_v6  ;;  %234 = vst.msk [vmem:[#allocation3 + $0x10] sm:$0xff] %vm227_vm2, %v375_v42 }
   0x9   :  { %235 = vst.msk [vmem:[#allocation3 + $0x18] sm:$0xff] %vm227_vm2, %v375_v42  ;;  %v246_v60 = vld [vmem:[#allocation2] sm:$0xff] }
   0xa   :  { %212 = vperm.xlu1 %373, %v194_v10   ;;  %v247_v63 = vld [vmem:[#allocation2 + $0x8] sm:$0xff] }
   0xb   :  { %v248_v4 = vld [vmem:[#allocation2 + $0x10] sm:$0xff] }
   0xd   :  { %v267_v3 = vld [vmem:[#allocation3] sm:$0xff] }
   0xe   :  { %v268_v10 = vld [vmem:[#allocation3 + $0x8] sm:$0xff] }
  0x10   :  { %202 = vperm.xlu0 %372, %v192_v9  }
  0x16   :  { %335 = vmatmul.msk.bf16.gmra.mxu0 %vm52_vm0, %v363_v11  ;;  %341 = vmatmul.msk.bf16.gmra.mxu1 %vm52_vm0, %v363_v11 }
  0x17   :  { %347 = vmatmul.msk.bf16.gmra.mxu2 %vm52_vm0, %v363_v11  ;;  %v249_v11 = vld [vmem:[#allocation2 + $0x18] sm:$0xff] }
  0x18   :  { %361 = vmatmul.msk.bf16.gmra.mxu3 %vm52_vm0, %v368_v12 }
  0x74   :  { %v208_v38 = vpop.permute.xlu1 %207 }
  0x7a   :  { %v198_v23 = vpop.permute.xlu0 %197 }
  0x7c   :  { %v213_v53 = vpop.permute.xlu1 %212 }
  0x82   :  { %v203_v34 = vpop.permute.xlu0 %202 }
  0x83   :  { %v68_v13 = vpop.f32.mrf.mxu0  ;;  %v95_v14 = vpop.f32.mrf.mxu1 }
  0x84   :  { %v105_v16 = vmax.f32 %v68_v13, %v95_v14 }
  0x8a   :  { %v126_v17 = vpop.f32.mrf.mxu2 }
  0x8b   :  { %v177_v18 = vpop.f32.mrf.mxu3  ;;  %v136_v20 = vmax.f32 %v105_v16, %v126_v17  ;;  %v70_v21 = vpop.f32.mrf.mxu0 }
  0x8c   :  { %v97_v22 = vpop.f32.mrf.mxu1 }
  0x8d   :  { %v187_v24 = vadd.f32 %v177_v18, %v136_v20  ;;  %v106_v26 = vmax.f32 %v70_v21, %v97_v22  ;;  %v269_v18 = vld [vmem:[#allocation3 + $0x10] sm:$0xff] }
  0x8f   :  { %v215_v25 = vadd.f32 %v198_v23, %v187_v24  ;;  %v270_v23 = vld [vmem:[#allocation3 + $0x18] sm:$0xff] }
  0x91   :  { %v242_v27 = vsel %vm241_vm1, %v215_v25, 0.0  ;;  %219 = vst [vmem:[%s541_s7] sm:$0xff] %v215_v25 }
  0x92   :  { %v128_v28 = vpop.f32.mrf.mxu2  ;;  %250 = vadd.xlane.f32.xlu2 %v242_v27  ;;  %v271_v48 = vmul.f32 %v242_v27, %v242_v27 }
  0x93   :  { %v179_v29 = vpop.f32.mrf.mxu3  ;;  %v137_v30 = vmax.f32 %v106_v26, %v128_v28  ;;  %v73_v31 = vpop.f32.mrf.mxu0 }
  0x94   :  { %v100_v32 = vpop.f32.mrf.mxu1 }
  0x95   :  { %v188_v33 = vadd.f32 %v179_v29, %v137_v30  ;;  %v107_v36 = vmax.f32 %v73_v31, %v100_v32 }
  0x97   :  { %v216_v35 = vadd.f32 %v203_v34, %v188_v33 }
  0x99   :  { %v243_v37 = vsel %vm241_vm1, %v216_v35, 0.0  ;;  %220 = vst [vmem:[%s541_s7 + $0x8] sm:$0xff] %v216_v35 }
  0x9a   :  { %252 = vadd.xlane.f32.xlu2 %v243_v37  ;;  %v131_v39 = vpop.f32.mrf.mxu2  ;;  %v272_v56 = vmul.f32 %v243_v37, %v243_v37 }
  0x9b   :  { %v182_v40 = vpop.f32.mrf.mxu3  ;;  %v138_v41 = vmax.f32 %v107_v36, %v131_v39  ;;  %v75_v43 = vpop.f32.mrf.mxu0 }
  0x9c   :  { %v102_v44 = vpop.f32.mrf.mxu1 }
  0x9d   :  { %v189_v45 = vadd.f32 %v182_v40, %v138_v41  ;;  %v108_v47 = vmax.f32 %v75_v43, %v102_v44 }
  0x9f   :  { %v217_v46 = vadd.f32 %v208_v38, %v189_v45 }
  0xa1   :  { %221 = vst [vmem:[%s541_s7 + $0x10] sm:$0xff] %v217_v46  ;;  %v244_v49 = vsel %vm241_vm1, %v217_v46, 0.0 }
  0xa2   :  { %275 = vadd.xlane.f32.xlu2 %v271_v48  ;;  %v133_v50 = vpop.f32.mrf.mxu2  ;;  %254 = vadd.xlane.f32.xlu0 %v244_v49  ;;  %v273_v58 = vmul.f32 %v244_v49, %v244_v49 }
  0xa3   :  { %v184_v51 = vpop.f32.mrf.mxu3  ;;  %v139_v52 = vmax.f32 %v108_v47, %v133_v50 }
  0xa5   :  { %v190_v54 = vadd.f32 %v184_v51, %v139_v52 }
  0xa7   :  { %v218_v55 = vadd.f32 %v213_v53, %v190_v54 }
  0xa9   :  { %222 = vst [vmem:[%s541_s7 + $0x18] sm:$0xff] %v218_v55  ;;  %v245_v57 = vsel %vm241_vm1, %v218_v55, 0.0 }
  0xaa   :  { %277 = vadd.xlane.f32.xlu2 %v272_v56  ;;  %256 = vadd.xlane.f32.xlu1 %v245_v57  ;;  %v274_v59 = vmul.f32 %v245_v57, %v245_v57 }
  0xb2   :  { %279 = vadd.xlane.f32.xlu2 %v273_v58 }
  0xba   :  { %281 = vadd.xlane.f32.xlu2 %v274_v59 }
 0x105   :  { %v251_v61 = vpop.xlane.xlu2 %250 }
 0x106   :  { %v258_v62 = vadd.f32 %v251_v61, %v246_v60 }
 0x108   :  { %263 = vst.msk [vmem:[#allocation2] sm:$0xff] %vm227_vm2, %v258_v62 }
 0x10d   :  { %v253_v0 = vpop.xlane.xlu2 %252 }
 0x10e   :  { %v259_v1 = vadd.f32 %v253_v0, %v247_v63 }
 0x10f   :  { %v294_v2 = vld [vmem:[#allocation2] sm:$0xff] }
 0x110   :  { %298 = vst.msk [vmem:[%s542_s8] sm:$0xff] %vm227_vm2, %v294_v2 }
 0x111   :  { %264 = vst.msk [vmem:[#allocation2 + $0x8] sm:$0xff] %vm227_vm2, %v259_v1 }
 0x115   :  { %v276_v5 = vpop.xlane.xlu2 %275  ;;  %v255_v6 = vpop.xlane.xlu0 %254 }
 0x116   :  { %v283_v7 = vadd.f32 %v276_v5, %v267_v3  ;;  %v260_v8 = vadd.f32 %v255_v6, %v248_v4 }
 0x118   :  { %v295_v9 = vld [vmem:[#allocation2 + $0x8] sm:$0xff]  ;;  %287 = vst.msk [vmem:[#allocation3] sm:$0xff] %vm227_vm2, %v283_v7 }
 0x119   :  { %299 = vst.msk [vmem:[%s542_s8 + $0x8] sm:$0xff] %vm227_vm2, %v295_v9 }
 0x11a   :  { %265 = vst.msk [vmem:[#allocation2 + $0x10] sm:$0xff] %vm227_vm2, %v260_v8 }
 0x11d   :  { %v278_v12 = vpop.xlane.xlu2 %277  ;;  %v257_v13 = vpop.xlane.xlu1 %256 }
 0x11e   :  { %v284_v14 = vadd.f32 %v278_v12, %v268_v10  ;;  %v261_v16 = vadd.f32 %v257_v13, %v249_v11 }
 0x11f   :  { %v302_v15 = vld [vmem:[#allocation3] sm:$0xff] }
 0x120   :  { %306 = vst.msk [vmem:[%s543_s9] sm:$0xff] %vm227_vm2, %v302_v15 }
 0x121   :  { %288 = vst.msk [vmem:[#allocation3 + $0x8] sm:$0xff] %vm227_vm2, %v284_v14  ;;  %v296_v17 = vld [vmem:[#allocation2 + $0x10] sm:$0xff] }
 0x122   :  { %300 = vst.msk [vmem:[%s542_s8 + $0x10] sm:$0xff] %vm227_vm2, %v296_v17 }
 0x123   :  { %266 = vst.msk [vmem:[#allocation2 + $0x18] sm:$0xff] %vm227_vm2, %v261_v16 }
 0x125   :  { %v280_v19 = vpop.xlane.xlu2 %279 }
 0x126   :  { %v285_v20 = vadd.f32 %v280_v19, %v269_v18 }
 0x128   :  { %v303_v21 = vld [vmem:[#allocation3 + $0x8] sm:$0xff]  ;;  %289 = vst.msk [vmem:[#allocation3 + $0x10] sm:$0xff] %vm227_vm2, %v285_v20 }
 0x129   :  { %307 = vst.msk [vmem:[%s543_s9 + $0x8] sm:$0xff] %vm227_vm2, %v303_v21 }
 0x12a   :  { %v297_v22 = vld [vmem:[#allocation2 + $0x18] sm:$0xff] }
 0x12b   :  { %301 = vst.msk [vmem:[%s542_s8 + $0x18] sm:$0xff] %vm227_vm2, %v297_v22 }
 0x12d   :  { %v282_v24 = vpop.xlane.xlu2 %281 }
 0x12e   :  { %v286_v25 = vadd.f32 %v282_v24, %v270_v23 }
 0x12f   :  { %v304_v26 = vld [vmem:[#allocation3 + $0x10] sm:$0xff] }
 0x130   :  { %308 = vst.msk [vmem:[%s543_s9 + $0x10] sm:$0xff] %vm227_vm2, %v304_v26 }
 0x131   :  { %290 = vst.msk [vmem:[#allocation3 + $0x18] sm:$0xff] %vm227_vm2, %v286_v25 }
 0x138   :  { %v305_v27 = vld [vmem:[#allocation3 + $0x18] sm:$0xff] }
 0x139   :  { %309 = vst.msk [vmem:[%s543_s9 + $0x18] sm:$0xff] %vm227_vm2, %v305_v27 }

// kernel: multi_mesh_conv.8
= control target key start
LH: loop header
LB: loop body
LE: loop exit
PB: predicated region body
PF: predicated region fallthrough
CT: control target
= control target key end

     0   :  { %v113_v0 = vmov 0   ;;  %s176_s1 = inlined_call_operand.vmem [shape: f32[32,1], index: 1, kind: input, shape index: {}]   ;;  %s177_s2 = inlined_call_operand.vmem [shape: f32[32,1], index: 2, kind: input, shape index: {}]   ;;  %s178_s0 = inlined_call_operand.vmem [shape: f32[32,128], index: 0, kind: input, shape index: {}]   ;;  %s179_s3 = inlined_call_operand.vmem [shape: bf16[32,128], index: 3, kind: output, shape index: {}]  }
   0x1   :  { %111 = vset.pattern.permute.xlu1 %v113_v0  ;;  %110 = vset.pattern.permute.xlu0 %v113_v0  ;;  %v20_v1 = vld [vmem:[%s176_s1 + $0x10] sm:$0xff]  ;;  %v18_v2 = vld [vmem:[%s176_s1] sm:$0xff]  ;;  %v21_v4 = vld [vmem:[%s176_s1 + $0x18] sm:$0xff] }
   0x2   :  { %34 = vperm.xlu1 %111, %v20_v1   ;;  %24 = vperm.xlu0 %110, %v18_v2   ;;  %v46_v3 = vld [vmem:[%s177_s2] sm:$0xff]  ;;  %v19_v5 = vld [vmem:[%s176_s1 + $0x8] sm:$0xff]  ;;  %v49_v7 = vld [vmem:[%s177_s2 + $0x18] sm:$0xff] }
   0x3   :  { %112 = vset.pattern.permute.xlu2 %v113_v0  ;;  %v47_v6 = vld [vmem:[%s177_s2 + $0x8] sm:$0xff]  ;;  %v48_v8 = vld [vmem:[%s177_s2 + $0x10] sm:$0xff]  ;;  %v14_v12 = vld [vmem:[%s178_s0] sm:$0xff] }
   0x4   :  { %52 = vperm.xlu2 %112, %v46_v3   ;;  %v15_v14 = vld [vmem:[%s178_s0 + $0x8] sm:$0xff]  ;;  %v16_v22 = vld [vmem:[%s178_s0 + $0x10] sm:$0xff]  ;;  %v17_v23 = vld [vmem:[%s178_s0 + $0x18] sm:$0xff] }
   0xa   :  { %39 = vperm.xlu1 %111, %v21_v4   ;;  %29 = vperm.xlu0 %110, %v19_v5  }
   0xc   :  { %57 = vperm.xlu2 %112, %v47_v6  }
  0x12   :  { %67 = vperm.xlu1 %111, %v49_v7   ;;  %62 = vperm.xlu0 %110, %v48_v8  }
  0x5e   :  { %v53_v9 = vpop.permute.xlu2 %52 }
  0x66   :  { %v58_v19 = vpop.permute.xlu2 %57 }
  0x74   :  { %v35_v10 = vpop.permute.xlu1 %34  ;;  %v25_v11 = vpop.permute.xlu0 %24 }
  0x75   :  { %v42_v13 = vsub.f32 %v14_v12, %v25_v11  ;;  %v44_v25 = vsub.f32 %v16_v22, %v35_v10 }
  0x77   :  { %v70_v15 = vmul.f32 %v53_v9, %v42_v13 }
  0x79   :  { %v78_v20 = vmul.f32 0.2, %v70_v15  ;;  %vm74_vm0 = vcmp.ge.f32.partialorder %v70_v15, 0.0 }
  0x7b   :  { %v82_v26 = vsel %vm74_vm0, %v70_v15, %v78_v20 }
  0x7c   :  { %v40_v16 = vpop.permute.xlu1 %39  ;;  %v30_v17 = vpop.permute.xlu0 %29 }
  0x7d   :  { %v43_v18 = vsub.f32 %v15_v14, %v30_v17  ;;  %v45_v27 = vsub.f32 %v17_v23, %v40_v16 }
  0x7f   :  { %v71_v21 = vmul.f32 %v58_v19, %v43_v18 }
  0x81   :  { %vm75_vm1 = vcmp.ge.f32.partialorder %v71_v21, 0.0  ;;  %v79_v24 = vmul.f32 0.2, %v71_v21 }
  0x83   :  { %v83_v28 = vsel %vm75_vm1, %v71_v21, %v79_v24 }
  0x84   :  { %v101_v29 = vpack.c.bf16 %v83_v28, %v82_v26  ;;  %v68_v30 = vpop.permute.xlu1 %67  ;;  %v63_v31 = vpop.permute.xlu0 %62 }
  0x85   :  { %v73_v32 = vmul.f32 %v68_v30, %v45_v27  ;;  %v72_v33 = vmul.f32 %v63_v31, %v44_v25 }
  0x86   :  { %102 = vst [vmem:[%s179_s3] sm:$0xff] %v101_v29  }
  0x87   :  { %vm77_vm2 = vcmp.ge.f32.partialorder %v73_v32, 0.0  ;;  %v81_v34 = vmul.f32 0.2, %v73_v32  ;;  %vm76_vm3 = vcmp.ge.f32.partialorder %v72_v33, 0.0  ;;  %v80_v35 = vmul.f32 0.2, %v72_v33 }
  0x89   :  { %v85_v36 = vsel %vm77_vm2, %v73_v32, %v81_v34  ;;  %v84_v37 = vsel %vm76_vm3, %v72_v33, %v80_v35 }
  0x8a   :  { %v106_v38 = vpack.c.bf16 %v85_v36, %v84_v37 }
  0x8c   :  { %108 = vst [vmem:[%s179_s3 + $0x8] sm:$0xff] %v106_v38  }

// kernel: multi_mesh_conv.9
= control target key start
LH: loop header
LB: loop body
LE: loop exit
PB: predicated region body
PF: predicated region fallthrough
CT: control target
= control target key end

     0   :  { %v213_v3 = vmov 0   ;;  %vm44_vm0 = vcmask 261120   ;;  %s290_s0 = inlined_call_operand.vmem [shape: bf16[32,128], index: 0, kind: input, shape index: {}]   ;;  %s291_s1 = inlined_call_operand.vmem [shape: bf16[32,128], index: 1, kind: input, shape index: {}]   ;;  %s292_s2 = inlined_call_operand.vmem [shape: bf16[32,128], index: 2, kind: input, shape index: {}]   ;;  %s293_s3 = inlined_call_operand.vmem [shape: bf16[32,128], index: 3, kind: input, shape index: {}]   ;;  %s294_s6 = inlined_call_operand.vmem [shape: f32[8,1], index: 6, kind: input, shape index: {}]   ;;  %s295_s4 = inlined_call_operand.vmem [shape: bf16[8,32], index: 4, kind: input, shape index: {}]   ;;  %s296_s5 = inlined_call_operand.vmem [shape: bf16[8,32], index: 5, kind: input, shape index: {}]   ;;  %s297_s7 = inlined_call_operand.vmem [shape: f32[8,128], index: 7, kind: output, shape index: {}]  }
   0x1   :  { %v204_v0 = vld [vmem:[%s290_s0 + $0x8] sm:$0xff]  ;;  %212 = vset.pattern.permute.xlu0 %v213_v3  ;;  %v203_v5 = vld [vmem:[%s290_s0] sm:$0xff] }
   0x2   :  { %v206_v1 = vld [vmem:[%s291_s1 + $0x8] sm:$0xff]  ;;  %54 = vmatpush.bf16.msra.mxu0 %v204_v0  ;;  %v205_v6 = vld [vmem:[%s291_s1] sm:$0xff] }
   0x3   :  { %v208_v2 = vld [vmem:[%s292_s2 + $0x8] sm:$0xff]  ;;  %83 = vmatpush.bf16.msra.mxu1 %v206_v1  ;;  %v207_v7 = vld [vmem:[%s292_s2] sm:$0xff] }
   0x4   :  { %v210_v4 = vld [vmem:[%s293_s3 + $0x8] sm:$0xff]  ;;  %113 = vmatpush.bf16.msra.mxu2 %v208_v2  ;;  %v209_v8 = vld [vmem:[%s293_s3] sm:$0xff] }
   0x5   :  { %147 = vmatpush.bf16.msra.mxu3 %v210_v4  ;;  %v155_v9 = vld [vmem:[%s294_s6] sm:$0xff] }
   0x6   :  { %158 = vperm.xlu0 %212, %v155_v9   ;;  %55 = vmatpush.bf16.msra.mxu0 %v203_v5  ;;  %v27_v10 = vld [vmem:[%s295_s4] sm:$0xf] }
   0x7   :  { %84 = vmatpush.bf16.msra.mxu1 %v205_v6  ;;  %v121_v11 = vld [vmem:[%s296_s5] sm:$0xf] }
   0x8   :  { %114 = vmatpush.bf16.msra.mxu2 %v207_v7 }
   0x9   :  { %148 = vmatpush.bf16.msra.mxu3 %v209_v8  ;;  %175 = vmatmul.msk.bf16.vlgmr.msra.gmra.mxu0 %vm44_vm0, %v27_v10 }
   0xa   :  { %184 = vmatmul.msk.bf16.vlgmr.msra.gmra.mxu1 %vm44_vm0, %v27_v10 }
   0xb   :  { %193 = vmatmul.msk.bf16.vlgmr.msra.gmra.mxu2 %vm44_vm0, %v27_v10 }
   0xc   :  { %202 = vmatmul.msk.bf16.vlgmr.msra.gmra.mxu3 %vm44_vm0, %v121_v11 }
  0x78   :  { %v159_v20 = vpop.permute.xlu0 %158 }
  0x86   :  { %v57_v12 = vpop.f32.mrf.mxu0 }
  0x87   :  { %v86_v13 = vpop.f32.mrf.mxu1 }
  0x88   :  { %v90_v14 = vmax.f32 %v57_v12, %v86_v13 }
  0x8e   :  { %v116_v15 = vpop.f32.mrf.mxu2  ;;  %v59_v18 = vpop.f32.mrf.mxu0 }
  0x8f   :  { %v150_v16 = vpop.f32.mrf.mxu3  ;;  %v120_v17 = vmax.f32 %v90_v14, %v116_v15  ;;  %v88_v19 = vpop.f32.mrf.mxu1 }
  0x91   :  { %v154_v21 = vadd.f32 %v150_v16, %v120_v17 }
  0x93   :  { %v161_v22 = vadd.f32 %v159_v20, %v154_v21 }
  0x95   :  { %162 = vst [vmem:[%s297_s7] sm:$0xff] %v161_v22 }
  0x96   :  { %v118_v23 = vpop.f32.mrf.mxu2 }
  0x97   :  { %v152_v24 = vpop.f32.mrf.mxu3 }

</bundles_post_ra>
